<compile_context>
chip_gen: v5e
topology: v5e:2x2
jax: 0.10.0
libtpu: 0.0.40
codegen_flags: <defaults>
</compile_context>

<pallas_src>
import functools

import jax
import jax.numpy as jnp
from jax import lax
from jax.experimental import pallas as pl
from jax.experimental.pallas import tpu as pltpu


def _mha_kernel(x_ref, wq_ref, wk_ref, wv_ref, wp_ref, bp_ref,
                out_ref, wei0_ref,
                q_sc, k_sc, v_sc, o_slab,
                *, num_heads, head_size, causal, tq):
    """One grid step = (batch b, query tile qi). Computes all heads + proj."""
    bf16 = jnp.bfloat16
    f32 = jnp.float32
    T = x_ref.shape[1]
    C = x_ref.shape[2]
    scale = float(C) ** -0.5              # module scales by n_embd**-0.5

    # --- K/V projections: once per batch (q == 0); persist in VMEM scratch ---
    @pl.when(pl.program_id(1) == 0)
    def _():
        xkv = x_ref[0]                    # (T, C) bf16
        k_sc[...] = jnp.dot(xkv, wk_ref[...],
                            preferred_element_type=f32).astype(bf16)
        v_sc[...] = jnp.dot(xkv, wv_ref[...],
                            preferred_element_type=f32).astype(bf16)

    # --- Q projection for this query tile (sliced from the resident block) ---
    q0 = pl.multiple_of(pl.program_id(1) * tq, tq)
    xq = x_ref[0, pl.ds(q0, tq), :]       # (tq, C) bf16
    # Pre-scale q (O(tq*C)) instead of the (tq, T) scores for every head.
    q_sc[...] = (jnp.dot(xq, wq_ref[...], preferred_element_type=f32)
                 * scale).astype(bf16)

    if causal:
        # Build the mask bias once per grid step; reused by every head.
        row = q0 + lax.broadcasted_iota(jnp.int32, (tq, T), 0)
        col = lax.broadcasted_iota(jnp.int32, (tq, T), 1)
        # Large finite negative instead of -inf (NaN-proof under full masking).
        mask_bias = jnp.where(col <= row, 0.0, -1e30).astype(f32)
    else:
        mask_bias = None

    # Contract last dim of q against last dim of k -> no explicit k.T (no XLU).
    score_dims = (((1,), (1,)), ((), ()))

    def attend(h, exact_recip):
        sl = pl.ds(h * head_size, head_size)          # static offset
        q = q_sc[:, sl]                               # (tq, hs) bf16
        k = k_sc[:, sl]                               # (T,  hs) bf16
        v = v_sc[:, sl]                               # (T,  hs) bf16

        s = lax.dot_general(q, k, score_dims,
                            preferred_element_type=f32)   # (tq, T) f32
        if mask_bias is not None:
            s = s + mask_bias

        m = jnp.max(s, axis=-1, keepdims=True)
        p = jnp.exp(s - m)                                # f32 (v5e-safe)
        l = jnp.sum(p, axis=-1, keepdims=True)
        if exact_recip:
            inv_l = 1.0 / l                               # exact (tiny vector)
        else:
            inv_l = pl.reciprocal(l, approx=True)         # EUP slot

        o = jnp.dot(p.astype(bf16), v,
                    preferred_element_type=f32)           # (tq, hs) f32
        o_slab[:, sl] = (o * inv_l).astype(bf16)
        return p, inv_l

    # Head 0 handled explicitly: its normalized attention map is returned
    # (as in the PyTorch module), so use an exact reciprocal for it.
    p0, inv_l0 = attend(0, exact_recip=True)
    wei0_ref[0] = (p0 * inv_l0).astype(wei0_ref.dtype)

    # Remaining heads: H is small & static; operands are staged in VMEM
    # scratch so per-head live ranges stay bounded within the unroll.
    for h in range(1, num_heads):
        attend(h, exact_recip=False)

    # Head concat + output projection as one full-width (K = C) bf16 matmul.
    proj = jnp.dot(o_slab[...], wp_ref[...], preferred_element_type=f32)
    out_ref[0] = (proj + bp_ref[...]).astype(out_ref.dtype)


def multi_head_attention(x, wq, wk, wv, w_proj, b_proj, *, causal=True,
                         tq=None, wei_dtype=jnp.float32):
    """
    x        : (B, T, C) float32
    wq/wk/wv : (H, C, hs)   (already transposed from PyTorch's (hs, C))
    w_proj   : (C, C)  = PyTorch proj.weight.T  (in_features, out_features)
    b_proj   : (C,)
    Returns (out (B,T,C), wei_head0 (B,T,T)) matching the PyTorch forward.
    Set wei_dtype=jnp.bfloat16 to halve the O(B*T^2) attention-map writeback.
    """
    B, T, C = x.shape
    H, _, hs = wq.shape
    assert H * hs == C

    if tq is None:
        tq = T if T <= 256 else 256
    assert T % tq == 0, "ragged sequence lengths not supported (no tail mask)"
    nq = T // tq

    bf16 = jnp.bfloat16

    # Fuse per-head weights into (C, H*hs) = (C, C): column block h*hs:(h+1)*hs
    # is head h's weight. Pre-cast to bf16 (native MXU input). x likewise.
    def fuse(w):  # (H, C, hs) -> (C, C)
        return jnp.transpose(w, (1, 0, 2)).reshape(C, H * hs).astype(bf16)

    x_b = x.astype(bf16)
    wq_all, wk_all, wv_all = fuse(wq), fuse(wk), fuse(wv)
    wp = w_proj.astype(bf16)                      # (C, C), (in, out) layout
    bp = b_proj.reshape(1, C).astype(jnp.float32)

    kernel = functools.partial(_mha_kernel, num_heads=H, head_size=hs,
                               causal=causal, tq=tq)

    wei_bytes = jnp.dtype(wei_dtype).itemsize

    # VMEM budget (bytes): single-buffered weights + bias, double-buffered x /
    # out / wei0 blocks, persistent bf16 k/v/q/o scratch, f32 softmax temps.
    vmem_needed = (
        4 * C * C * 2 + C * 4                 # Wq/Wk/Wv/Wp (bf16) + bias (f32)
        + 2 * T * C * 2                       # x block (bf16, double-buffered)
        + 2 * T * C * 2                       # k_sc + v_sc scratch (bf16)
        + 2 * tq * C * 2                      # q_sc + o_slab scratch (bf16)
        + 2 * tq * C * 4                      # out block (f32, double-buffered)
        + 2 * tq * T * wei_bytes              # wei0 block (double-buffered)
        + 4 * tq * T * 4                      # s/p/mask f32 temporaries
    )
    # Clamp to 64 MiB so the request is legal on v7x; v5e/v6e have 128 MiB.
    vmem_limit = int(min(64 << 20, max(32 << 20, 2 * vmem_needed)))

    cost = pl.CostEstimate(
        flops=int(2 * B * T * C * C * 4 + 4 * B * T * T * C),
        transcendentals=int(B * H * T * T),
        bytes_accessed=int(B * T * C * 2 + 4 * C * C * 2 + C * 4
                           + B * T * C * 4 + B * T * T * wei_bytes),
    )

    def weight_spec(shape, pipeline_mode):
        idx_map = lambda b, q: (0,) * len(shape)
        if pipeline_mode is None:
            return pl.BlockSpec(shape, idx_map)
        return pl.BlockSpec(shape, idx_map, pipeline_mode=pipeline_mode)

    def run(weight_pipeline_mode):
        wspec = lambda s: weight_spec(s, weight_pipeline_mode)
        return pl.pallas_call(
            kernel,
            out_shape=(
                jax.ShapeDtypeStruct((B, T, C), jnp.float32),
                jax.ShapeDtypeStruct((B, T, T), wei_dtype),
            ),
            grid_spec=pltpu.PrefetchScalarGridSpec(
                num_scalar_prefetch=0,
                grid=(B, nq),
                in_specs=[
                    pl.BlockSpec((1, T, C), lambda b, q: (b, 0, 0)),  # x (bf16)
                    wspec((C, C)),                                    # Wq fused
                    wspec((C, C)),                                    # Wk fused
                    wspec((C, C)),                                    # Wv fused
                    wspec((C, C)),                                    # W_proj
                    wspec((1, C)),                                    # b_proj
                ],
                out_specs=[
                    pl.BlockSpec((1, tq, C), lambda b, q: (b, q, 0)),  # out
                    pl.BlockSpec((1, tq, T), lambda b, q: (b, q, 0)),  # wei head0
                ],
                scratch_shapes=[
                    pltpu.VMEM((tq, C), jnp.bfloat16),   # q_sc
                    pltpu.VMEM((T, C), jnp.bfloat16),    # k_sc (persists over q)
                    pltpu.VMEM((T, C), jnp.bfloat16),    # v_sc (persists over q)
                    pltpu.VMEM((tq, C), jnp.bfloat16),   # o_slab (head concat)
                ],
            ),
            compiler_params=pltpu.CompilerParams(
                dimension_semantics=("parallel", "arbitrary"),
                vmem_limit_bytes=vmem_limit),
            cost_estimate=cost,
        )(x_b, wq_all, wk_all, wv_all, wp, bp)

    try:
        out, wei0 = run(pl.Buffered(1))        # single-buffer constant weights
    except Exception:
        # Fallback for environments where per-operand pipeline_mode is not
        # supported by the TPU lowering; weights are then double-buffered.
        out, wei0 = run(None)
    return out, wei0


def _reference(x, wq, wk, wv, w_proj, b_proj, causal=True):
    """Pure-JAX mirror of the PyTorch forward (bf16 matmul inputs, f32 accum)."""
    B, T, C = x.shape
    scale = C ** -0.5
    bf, f32 = jnp.bfloat16, jnp.float32
    xb = x.astype(bf)
    q = jnp.einsum("btc,hcd->bhtd", xb, wq.astype(bf),
                   preferred_element_type=f32) * scale
    k = jnp.einsum("btc,hcd->bhtd", xb, wk.astype(bf),
                   preferred_element_type=f32)
    v = jnp.einsum("btc,hcd->bhtd", xb, wv.astype(bf),
                   preferred_element_type=f32)
    s = jnp.einsum("bhtd,bhsd->bhts", q.astype(bf), k.astype(bf),
                   preferred_element_type=f32)
    if causal:
        mask = jnp.tril(jnp.ones((T, T), bool))
        s = jnp.where(mask[None, None], s, -jnp.inf)
    w = jax.nn.softmax(s, axis=-1)
    o = jnp.einsum("bhts,bhsd->bhtd", w.astype(bf), v.astype(bf),
                   preferred_element_type=f32)
    cat = jnp.transpose(o, (0, 2, 1, 3)).reshape(B, T, C)
    out = jnp.einsum("btc,cd->btd", cat.astype(bf), w_proj.astype(bf),
                     preferred_element_type=f32) + b_proj
    return out, w[:, 0]


if __name__ == "__main__":
    # Small shapes consistent with the module
    B, T = 2, 8                      # batch, block_size (= seq len)
    n_embd, num_heads = 32, 4
    head_size = n_embd // num_heads  # 8
    name = "Decoder"                 # -> causal mask applied

    key = jax.random.PRNGKey(0)
    ks = jax.random.split(key, 6)
    x = jax.random.normal(ks[0], (B, T, n_embd), jnp.float32)
    # per-head Linear(n_embd, head_size, bias=False) weights, stored as (H, C, hs)
    wq = 0.1 * jax.random.normal(ks[1], (num_heads, n_embd, head_size), jnp.float32)
    wk = 0.1 * jax.random.normal(ks[2], (num_heads, n_embd, head_size), jnp.float32)
    wv = 0.1 * jax.random.normal(ks[3], (num_heads, n_embd, head_size), jnp.float32)
    # proj = Linear(n_embd, n_embd): store W.T as (C, C) plus bias (C,)
    w_proj = 0.1 * jax.random.normal(ks[4], (n_embd, n_embd), jnp.float32)
    b_proj = 0.1 * jax.random.normal(ks[5], (n_embd,), jnp.float32)

    out, wei0 = multi_head_attention(x, wq, wk, wv, w_proj, b_proj,
                                     causal=(name == "Decoder"))
    jax.block_until_ready(out)
    jax.block_until_ready(wei0)

    ref_out, ref_wei0 = _reference(x, wq, wk, wv, w_proj, b_proj,
                                   causal=(name == "Decoder"))
    # bf16 MXU inputs + approximate (EUP) reciprocal => relaxed tolerance.
    assert jnp.allclose(out, ref_out, atol=2e-2, rtol=2e-2), \
        float(jnp.max(jnp.abs(out - ref_out)))
    assert jnp.allclose(wei0, ref_wei0, atol=2e-2, rtol=2e-2), \
        float(jnp.max(jnp.abs(wei0 - ref_wei0)))

    print("KERNEL_OK")
</pallas_src>

<mosaic_0001>
module attributes {stable_mosaic.version = 11 : i64} {
  func.func @_mha_kernel(%arg0: i32, %arg1: i32, %arg2: memref<1x8x32xbf16, #tpu.memory_space<vmem>>, %arg3: memref<32x32xbf16, #tpu.memory_space<vmem>>, %arg4: memref<32x32xbf16, #tpu.memory_space<vmem>>, %arg5: memref<32x32xbf16, #tpu.memory_space<vmem>>, %arg6: memref<32x32xbf16, #tpu.memory_space<vmem>>, %arg7: memref<1x32xf32, #tpu.memory_space<vmem>>, %arg8: memref<1x8x32xf32, #tpu.memory_space<vmem>>, %arg9: memref<1x8x8xf32, #tpu.memory_space<vmem>>, %arg10: memref<8x32xbf16, #tpu.memory_space<vmem>>, %arg11: memref<8x32xbf16, #tpu.memory_space<vmem>>, %arg12: memref<8x32xbf16, #tpu.memory_space<vmem>>, %arg13: memref<8x32xbf16, #tpu.memory_space<vmem>>) attributes {dimension_semantics = [#tpu.dimension_semantics<parallel>, #tpu.dimension_semantics<arbitrary>], iteration_bounds = array<i64: 2, 1>, scalar_prefetch = 0 : i64, scratch_operands = 4 : i64, tpu.core_type = #tpu.core_type<tc>, window_params = [{transform_indices = @transform_0, window_bounds = array<i64: 1, 8, 32>}, {pipeline_mode = #tpu.pipeline_mode<synchronous>, transform_indices = @transform_1, window_bounds = array<i64: 32, 32>}, {pipeline_mode = #tpu.pipeline_mode<synchronous>, transform_indices = @transform_2, window_bounds = array<i64: 32, 32>}, {pipeline_mode = #tpu.pipeline_mode<synchronous>, transform_indices = @transform_3, window_bounds = array<i64: 32, 32>}, {pipeline_mode = #tpu.pipeline_mode<synchronous>, transform_indices = @transform_4, window_bounds = array<i64: 32, 32>}, {pipeline_mode = #tpu.pipeline_mode<synchronous>, transform_indices = @transform_5, window_bounds = array<i64: 1, 32>}, {transform_indices = @transform_6, window_bounds = array<i64: 1, 8, 32>}, {transform_indices = @transform_7, window_bounds = array<i64: 1, 8, 8>}]} {
    %c0_i32 = arith.constant 0 : i32
    %0 = arith.cmpi eq, %arg1, %c0_i32 : i32
    %1 = arith.extui %0 : i1 to i32
    %c0_i32_0 = arith.constant 0 : i32
    %2 = arith.cmpi ne, %1, %c0_i32_0 : i32
    scf.if %2 {
      %c0_68 = arith.constant 0 : index
      %c0_69 = arith.constant 0 : index
      %c0_70 = arith.constant 0 : index
      %113 = vector.load %arg2[%c0_68, %c0_69, %c0_70] : memref<1x8x32xbf16, #tpu.memory_space<vmem>>, vector<1x8x32xbf16>
      %114 = vector.shape_cast %113 : vector<1x8x32xbf16> to vector<8x32xbf16>
      %c0_71 = arith.constant 0 : index
      %c0_72 = arith.constant 0 : index
      %115 = vector.load %arg4[%c0_71, %c0_72] : memref<32x32xbf16, #tpu.memory_space<vmem>>, vector<32x32xbf16>
      %cst_73 = arith.constant dense<0.000000e+00> : vector<8x32xf32>
      %116 = tpu.matmul %114, %115, %cst_73 {dimension_numbers = #tpu.dot_dimension_numbers<[1], [0], [0], [1], [0, 0, 1, 1], [], []>} : vector<8x32xbf16>, vector<32x32xbf16>, vector<8x32xf32> -> vector<8x32xf32>
      %117 = arith.truncf %116 : vector<8x32xf32> to vector<8x32xbf16>
      %c0_74 = arith.constant 0 : index
      %c0_75 = arith.constant 0 : index
      %118 = vector.load %arg11[%c0_74, %c0_75] : memref<8x32xbf16, #tpu.memory_space<vmem>>, vector<8x32xbf16>
      tpu.vector_store %arg11[%c0_74, %c0_75], %117 {strides = array<i32>} : memref<8x32xbf16, #tpu.memory_space<vmem>>, vector<8x32xbf16>,
      %c0_76 = arith.constant 0 : index
      %c0_77 = arith.constant 0 : index
      %119 = vector.load %arg5[%c0_76, %c0_77] : memref<32x32xbf16, #tpu.memory_space<vmem>>, vector<32x32xbf16>
      %cst_78 = arith.constant dense<0.000000e+00> : vector<8x32xf32>
      %120 = tpu.matmul %114, %119, %cst_78 {dimension_numbers = #tpu.dot_dimension_numbers<[1], [0], [0], [1], [0, 0, 1, 1], [], []>} : vector<8x32xbf16>, vector<32x32xbf16>, vector<8x32xf32> -> vector<8x32xf32>
      %121 = arith.truncf %120 : vector<8x32xf32> to vector<8x32xbf16>
      %c0_79 = arith.constant 0 : index
      %c0_80 = arith.constant 0 : index
      %122 = vector.load %arg12[%c0_79, %c0_80] : memref<8x32xbf16, #tpu.memory_space<vmem>>, vector<8x32xbf16>
      tpu.vector_store %arg12[%c0_79, %c0_80], %121 {strides = array<i32>} : memref<8x32xbf16, #tpu.memory_space<vmem>>, vector<8x32xbf16>,
    } else {
    }
    %c8_i32 = arith.constant 8 : i32
    %3 = arith.muli %arg1, %c8_i32 : i32
    %4 = tpu.assume_multiple %3, 8 : i32
    %c0 = arith.constant 0 : index
    %5 = arith.index_cast %4 : i32 to index
    %c0_1 = arith.constant 0 : index
    %6 = vector.load %arg2[%c0, %5, %c0_1] : memref<1x8x32xbf16, #tpu.memory_space<vmem>>, vector<1x8x32xbf16>
    %7 = vector.shape_cast %6 : vector<1x8x32xbf16> to vector<8x32xbf16>
    %c0_2 = arith.constant 0 : index
    %c0_3 = arith.constant 0 : index
    %8 = vector.load %arg3[%c0_2, %c0_3] : memref<32x32xbf16, #tpu.memory_space<vmem>>, vector<32x32xbf16>
    %cst = arith.constant dense<0.000000e+00> : vector<8x32xf32>
    %9 = tpu.matmul %7, %8, %cst {dimension_numbers = #tpu.dot_dimension_numbers<[1], [0], [0], [1], [0, 0, 1, 1], [], []>} : vector<8x32xbf16>, vector<32x32xbf16>, vector<8x32xf32> -> vector<8x32xf32>
    %cst_4 = arith.constant 0.176776692 : f32
    %10 = vector.broadcast %cst_4 : f32 to vector<8x32xf32>
    %11 = arith.mulf %9, %10 : vector<8x32xf32>
    %12 = arith.truncf %11 : vector<8x32xf32> to vector<8x32xbf16>
    %c0_5 = arith.constant 0 : index
    %c0_6 = arith.constant 0 : index
    %13 = vector.load %arg10[%c0_5, %c0_6] : memref<8x32xbf16, #tpu.memory_space<vmem>>, vector<8x32xbf16>
    tpu.vector_store %arg10[%c0_5, %c0_6], %12 {strides = array<i32>} : memref<8x32xbf16, #tpu.memory_space<vmem>>, vector<8x32xbf16>,
    %14 = tpu.iota {dimensions = array<i32: 0>} : vector<8x8xi32>
    %15 = vector.broadcast %4 : i32 to vector<8x8xi32>
    %16 = arith.addi %15, %14 : vector<8x8xi32>
    %17 = tpu.iota {dimensions = array<i32: 1>} : vector<8x8xi32>
    %18 = arith.cmpi sle, %17, %16 : vector<8x8xi32>
    %cst_7 = arith.constant 0.000000e+00 : f32
    %cst_8 = arith.constant -1.000000e+30 : f32
    %19 = vector.broadcast %cst_7 : f32 to vector<8x8xf32>
    %20 = vector.broadcast %cst_8 : f32 to vector<8x8xf32>
    %21 = arith.select %18, %19, %20 : vector<8x8xi1>, vector<8x8xf32>
    %c0_9 = arith.constant 0 : index
    %c0_10 = arith.constant 0 : index
    %22 = vector.load %arg10[%c0_9, %c0_10] : memref<8x32xbf16, #tpu.memory_space<vmem>>, vector<8x8xbf16>
    %c0_11 = arith.constant 0 : index
    %c0_12 = arith.constant 0 : index
    %23 = vector.load %arg11[%c0_11, %c0_12] : memref<8x32xbf16, #tpu.memory_space<vmem>>, vector<8x8xbf16>
    %c0_13 = arith.constant 0 : index
    %c0_14 = arith.constant 0 : index
    %24 = vector.load %arg12[%c0_13, %c0_14] : memref<8x32xbf16, #tpu.memory_space<vmem>>, vector<8x8xbf16>
    %cst_15 = arith.constant dense<0.000000e+00> : vector<8x8xf32>
    %25 = tpu.matmul %22, %23, %cst_15 {dimension_numbers = #tpu.dot_dimension_numbers<[1], [1], [0], [0], [0, 0, 1, 0], [], []>} : vector<8x8xbf16>, vector<8x8xbf16>, vector<8x8xf32> -> vector<8x8xf32>
    %26 = arith.addf %25, %21 : vector<8x8xf32>
    %cst_16 = arith.constant dense<0xFF800000> : vector<8xf32>
    %27 = vector.multi_reduction <maximumf>, %26, %cst_16 [1] : vector<8x8xf32> to vector<8xf32>
    %28 = vector.shape_cast %27 : vector<8xf32> to vector<8x1xf32>
    %29 = vector.broadcast %28 : vector<8x1xf32> to vector<8x8xf32>
    %30 = arith.subf %26, %29 : vector<8x8xf32>
    %31 = math.exp %30 : vector<8x8xf32>
    %cst_17 = arith.constant dense<0.000000e+00> : vector<8xf32>
    %32 = vector.multi_reduction <add>, %31, %cst_17 [1] : vector<8x8xf32> to vector<8xf32>
    %33 = vector.shape_cast %32 : vector<8xf32> to vector<8x1xf32>
    %cst_18 = arith.constant 1.000000e+00 : f32
    %34 = vector.broadcast %cst_18 : f32 to vector<8x1xf32>
    %35 = arith.divf %34, %33 : vector<8x1xf32>
    %36 = arith.truncf %31 : vector<8x8xf32> to vector<8x8xbf16>
    %cst_19 = arith.constant dense<0.000000e+00> : vector<8x8xf32>
    %37 = tpu.matmul %36, %24, %cst_19 {dimension_numbers = #tpu.dot_dimension_numbers<[1], [0], [0], [1], [0, 0, 1, 1], [], []>} : vector<8x8xbf16>, vector<8x8xbf16>, vector<8x8xf32> -> vector<8x8xf32>
    %38 = vector.broadcast %35 : vector<8x1xf32> to vector<8x8xf32>
    %39 = arith.mulf %37, %38 : vector<8x8xf32>
    %40 = arith.truncf %39 : vector<8x8xf32> to vector<8x8xbf16>
    %c0_20 = arith.constant 0 : index
    %c0_21 = arith.constant 0 : index
    %41 = vector.load %arg13[%c0_20, %c0_21] : memref<8x32xbf16, #tpu.memory_space<vmem>>, vector<8x8xbf16>
    tpu.vector_store %arg13[%c0_20, %c0_21], %40 {strides = array<i32>} : memref<8x32xbf16, #tpu.memory_space<vmem>>, vector<8x8xbf16>,
    %42 = vector.broadcast %35 : vector<8x1xf32> to vector<8x8xf32>
    %43 = arith.mulf %31, %42 : vector<8x8xf32>
    %c0_22 = arith.constant 0 : index
    %c0_23 = arith.constant 0 : index
    %c0_24 = arith.constant 0 : index
    %44 = vector.load %arg9[%c0_22, %c0_23, %c0_24] : memref<1x8x8xf32, #tpu.memory_space<vmem>>, vector<1x8x8xf32>
    %45 = vector.shape_cast %44 : vector<1x8x8xf32> to vector<8x8xf32>
    %46 = vector.shape_cast %43 : vector<8x8xf32> to vector<1x8x8xf32>
    tpu.vector_store %arg9[%c0_22, %c0_23, %c0_24], %46 {strides = array<i32>} : memref<1x8x8xf32, #tpu.memory_space<vmem>>, vector<1x8x8xf32>,
    %c0_25 = arith.constant 0 : index
    %c8 = arith.constant 8 : index
    %47 = vector.load %arg10[%c0_25, %c8] : memref<8x32xbf16, #tpu.memory_space<vmem>>, vector<8x8xbf16>
    %c0_26 = arith.constant 0 : index
    %c8_27 = arith.constant 8 : index
    %48 = vector.load %arg11[%c0_26, %c8_27] : memref<8x32xbf16, #tpu.memory_space<vmem>>, vector<8x8xbf16>
    %c0_28 = arith.constant 0 : index
    %c8_29 = arith.constant 8 : index
    %49 = vector.load %arg12[%c0_28, %c8_29] : memref<8x32xbf16, #tpu.memory_space<vmem>>, vector<8x8xbf16>
    %cst_30 = arith.constant dense<0.000000e+00> : vector<8x8xf32>
    %50 = tpu.matmul %47, %48, %cst_30 {dimension_numbers = #tpu.dot_dimension_numbers<[1], [1], [0], [0], [0, 0, 1, 0], [], []>} : vector<8x8xbf16>, vector<8x8xbf16>, vector<8x8xf32> -> vector<8x8xf32>
    %51 = arith.addf %50, %21 : vector<8x8xf32>
    %cst_31 = arith.constant dense<0xFF800000> : vector<8xf32>
    %52 = vector.multi_reduction <maximumf>, %51, %cst_31 [1] : vector<8x8xf32> to vector<8xf32>
    %53 = vector.shape_cast %52 : vector<8xf32> to vector<8x1xf32>
    %54 = vector.broadcast %53 : vector<8x1xf32> to vector<8x8xf32>
    %55 = arith.subf %51, %54 : vector<8x8xf32>
    %56 = math.exp %55 : vector<8x8xf32>
    %cst_32 = arith.constant dense<0.000000e+00> : vector<8xf32>
    %57 = vector.multi_reduction <add>, %56, %cst_32 [1] : vector<8x8xf32> to vector<8xf32>
    %58 = vector.shape_cast %57 : vector<8xf32> to vector<8x1xf32>
    %59 = tpu.reciprocal %58 {approx = true} : vector<8x1xf32> -> vector<8x1xf32>
    %60 = arith.truncf %56 : vector<8x8xf32> to vector<8x8xbf16>
    %cst_33 = arith.constant dense<0.000000e+00> : vector<8x8xf32>
    %61 = tpu.matmul %60, %49, %cst_33 {dimension_numbers = #tpu.dot_dimension_numbers<[1], [0], [0], [1], [0, 0, 1, 1], [], []>} : vector<8x8xbf16>, vector<8x8xbf16>, vector<8x8xf32> -> vector<8x8xf32>
    %62 = vector.broadcast %59 : vector<8x1xf32> to vector<8x8xf32>
    %63 = arith.mulf %61, %62 : vector<8x8xf32>
    %64 = arith.truncf %63 : vector<8x8xf32> to vector<8x8xbf16>
    %c0_34 = arith.constant 0 : index
    %c8_35 = arith.constant 8 : index
    %65 = vector.load %arg13[%c0_34, %c8_35] : memref<8x32xbf16, #tpu.memory_space<vmem>>, vector<8x8xbf16>
    tpu.vector_store %arg13[%c0_34, %c8_35], %64 {strides = array<i32>} : memref<8x32xbf16, #tpu.memory_space<vmem>>, vector<8x8xbf16>,
    %c0_36 = arith.constant 0 : index
    %c16 = arith.constant 16 : index
    %66 = vector.load %arg10[%c0_36, %c16] : memref<8x32xbf16, #tpu.memory_space<vmem>>, vector<8x8xbf16>
    %c0_37 = arith.constant 0 : index
    %c16_38 = arith.constant 16 : index
    %67 = vector.load %arg11[%c0_37, %c16_38] : memref<8x32xbf16, #tpu.memory_space<vmem>>, vector<8x8xbf16>
    %c0_39 = arith.constant 0 : index
    %c16_40 = arith.constant 16 : index
    %68 = vector.load %arg12[%c0_39, %c16_40] : memref<8x32xbf16, #tpu.memory_space<vmem>>, vector<8x8xbf16>
    %cst_41 = arith.constant dense<0.000000e+00> : vector<8x8xf32>
    %69 = tpu.matmul %66, %67, %cst_41 {dimension_numbers = #tpu.dot_dimension_numbers<[1], [1], [0], [0], [0, 0, 1, 0], [], []>} : vector<8x8xbf16>, vector<8x8xbf16>, vector<8x8xf32> -> vector<8x8xf32>
    %70 = arith.addf %69, %21 : vector<8x8xf32>
    %cst_42 = arith.constant dense<0xFF800000> : vector<8xf32>
    %71 = vector.multi_reduction <maximumf>, %70, %cst_42 [1] : vector<8x8xf32> to vector<8xf32>
    %72 = vector.shape_cast %71 : vector<8xf32> to vector<8x1xf32>
    %73 = vector.broadcast %72 : vector<8x1xf32> to vector<8x8xf32>
    %74 = arith.subf %70, %73 : vector<8x8xf32>
    %75 = math.exp %74 : vector<8x8xf32>
    %cst_43 = arith.constant dense<0.000000e+00> : vector<8xf32>
    %76 = vector.multi_reduction <add>, %75, %cst_43 [1] : vector<8x8xf32> to vector<8xf32>
    %77 = vector.shape_cast %76 : vector<8xf32> to vector<8x1xf32>
    %78 = tpu.reciprocal %77 {approx = true} : vector<8x1xf32> -> vector<8x1xf32>
    %79 = arith.truncf %75 : vector<8x8xf32> to vector<8x8xbf16>
    %cst_44 = arith.constant dense<0.000000e+00> : vector<8x8xf32>
    %80 = tpu.matmul %79, %68, %cst_44 {dimension_numbers = #tpu.dot_dimension_numbers<[1], [0], [0], [1], [0, 0, 1, 1], [], []>} : vector<8x8xbf16>, vector<8x8xbf16>, vector<8x8xf32> -> vector<8x8xf32>
    %81 = vector.broadcast %78 : vector<8x1xf32> to vector<8x8xf32>
    %82 = arith.mulf %80, %81 : vector<8x8xf32>
    %83 = arith.truncf %82 : vector<8x8xf32> to vector<8x8xbf16>
    %c0_45 = arith.constant 0 : index
    %c16_46 = arith.constant 16 : index
    %84 = vector.load %arg13[%c0_45, %c16_46] : memref<8x32xbf16, #tpu.memory_space<vmem>>, vector<8x8xbf16>
    tpu.vector_store %arg13[%c0_45, %c16_46], %83 {strides = array<i32>} : memref<8x32xbf16, #tpu.memory_space<vmem>>, vector<8x8xbf16>,
    %c0_47 = arith.constant 0 : index
    %c24 = arith.constant 24 : index
    %85 = vector.load %arg10[%c0_47, %c24] : memref<8x32xbf16, #tpu.memory_space<vmem>>, vector<8x8xbf16>
    %c0_48 = arith.constant 0 : index
    %c24_49 = arith.constant 24 : index
    %86 = vector.load %arg11[%c0_48, %c24_49] : memref<8x32xbf16, #tpu.memory_space<vmem>>, vector<8x8xbf16>
    %c0_50 = arith.constant 0 : index
    %c24_51 = arith.constant 24 : index
    %87 = vector.load %arg12[%c0_50, %c24_51] : memref<8x32xbf16, #tpu.memory_space<vmem>>, vector<8x8xbf16>
    %cst_52 = arith.constant dense<0.000000e+00> : vector<8x8xf32>
    %88 = tpu.matmul %85, %86, %cst_52 {dimension_numbers = #tpu.dot_dimension_numbers<[1], [1], [0], [0], [0, 0, 1, 0], [], []>} : vector<8x8xbf16>, vector<8x8xbf16>, vector<8x8xf32> -> vector<8x8xf32>
    %89 = arith.addf %88, %21 : vector<8x8xf32>
    %cst_53 = arith.constant dense<0xFF800000> : vector<8xf32>
    %90 = vector.multi_reduction <maximumf>, %89, %cst_53 [1] : vector<8x8xf32> to vector<8xf32>
    %91 = vector.shape_cast %90 : vector<8xf32> to vector<8x1xf32>
    %92 = vector.broadcast %91 : vector<8x1xf32> to vector<8x8xf32>
    %93 = arith.subf %89, %92 : vector<8x8xf32>
    %94 = math.exp %93 : vector<8x8xf32>
    %cst_54 = arith.constant dense<0.000000e+00> : vector<8xf32>
    %95 = vector.multi_reduction <add>, %94, %cst_54 [1] : vector<8x8xf32> to vector<8xf32>
    %96 = vector.shape_cast %95 : vector<8xf32> to vector<8x1xf32>
    %97 = tpu.reciprocal %96 {approx = true} : vector<8x1xf32> -> vector<8x1xf32>
    %98 = arith.truncf %94 : vector<8x8xf32> to vector<8x8xbf16>
    %cst_55 = arith.constant dense<0.000000e+00> : vector<8x8xf32>
    %99 = tpu.matmul %98, %87, %cst_55 {dimension_numbers = #tpu.dot_dimension_numbers<[1], [0], [0], [1], [0, 0, 1, 1], [], []>} : vector<8x8xbf16>, vector<8x8xbf16>, vector<8x8xf32> -> vector<8x8xf32>
    %100 = vector.broadcast %97 : vector<8x1xf32> to vector<8x8xf32>
    %101 = arith.mulf %99, %100 : vector<8x8xf32>
    %102 = arith.truncf %101 : vector<8x8xf32> to vector<8x8xbf16>
    %c0_56 = arith.constant 0 : index
    %c24_57 = arith.constant 24 : index
    %103 = vector.load %arg13[%c0_56, %c24_57] : memref<8x32xbf16, #tpu.memory_space<vmem>>, vector<8x8xbf16>
    tpu.vector_store %arg13[%c0_56, %c24_57], %102 {strides = array<i32>} : memref<8x32xbf16, #tpu.memory_space<vmem>>, vector<8x8xbf16>,
    %c0_58 = arith.constant 0 : index
    %c0_59 = arith.constant 0 : index
    %104 = vector.load %arg13[%c0_58, %c0_59] : memref<8x32xbf16, #tpu.memory_space<vmem>>, vector<8x32xbf16>
    %c0_60 = arith.constant 0 : index
    %c0_61 = arith.constant 0 : index
    %105 = vector.load %arg6[%c0_60, %c0_61] : memref<32x32xbf16, #tpu.memory_space<vmem>>, vector<32x32xbf16>
    %cst_62 = arith.constant dense<0.000000e+00> : vector<8x32xf32>
    %106 = tpu.matmul %104, %105, %cst_62 {dimension_numbers = #tpu.dot_dimension_numbers<[1], [0], [0], [1], [0, 0, 1, 1], [], []>} : vector<8x32xbf16>, vector<32x32xbf16>, vector<8x32xf32> -> vector<8x32xf32>
    %c0_63 = arith.constant 0 : index
    %c0_64 = arith.constant 0 : index
    %107 = vector.load %arg7[%c0_63, %c0_64] : memref<1x32xf32, #tpu.memory_space<vmem>>, vector<1x32xf32>
    %108 = vector.broadcast %107 : vector<1x32xf32> to vector<8x32xf32>
    %109 = arith.addf %106, %108 : vector<8x32xf32>
    %c0_65 = arith.constant 0 : index
    %c0_66 = arith.constant 0 : index
    %c0_67 = arith.constant 0 : index
    %110 = vector.load %arg8[%c0_65, %c0_66, %c0_67] : memref<1x8x32xf32, #tpu.memory_space<vmem>>, vector<1x8x32xf32>
    %111 = vector.shape_cast %110 : vector<1x8x32xf32> to vector<8x32xf32>
    %112 = vector.shape_cast %109 : vector<8x32xf32> to vector<1x8x32xf32>
    tpu.vector_store %arg8[%c0_65, %c0_66, %c0_67], %112 {strides = array<i32>} : memref<1x8x32xf32, #tpu.memory_space<vmem>>, vector<1x8x32xf32>,
    return
  }
  func.func @transform_0(%arg0: i32, %arg1: i32) -> (i32, i32, i32) {
    %c0_i32 = arith.constant 0 : i32
    %c0_i32_0 = arith.constant 0 : i32
    %c0_i32_1 = arith.constant 0 : i32
    return %arg0, %c0_i32, %c0_i32_0 : i32, i32, i32
  }
  func.func @transform_1(%arg0: i32, %arg1: i32) -> (i32, i32) {
    %c0_i32 = arith.constant 0 : i32
    %c0_i32_0 = arith.constant 0 : i32
    %c0_i32_1 = arith.constant 0 : i32
    return %c0_i32, %c0_i32_0 : i32, i32
  }
  func.func @transform_2(%arg0: i32, %arg1: i32) -> (i32, i32) {
    %c0_i32 = arith.constant 0 : i32
    %c0_i32_0 = arith.constant 0 : i32
    %c0_i32_1 = arith.constant 0 : i32
    return %c0_i32, %c0_i32_0 : i32, i32
  }
  func.func @transform_3(%arg0: i32, %arg1: i32) -> (i32, i32) {
    %c0_i32 = arith.constant 0 : i32
    %c0_i32_0 = arith.constant 0 : i32
    %c0_i32_1 = arith.constant 0 : i32
    return %c0_i32, %c0_i32_0 : i32, i32
  }
  func.func @transform_4(%arg0: i32, %arg1: i32) -> (i32, i32) {
    %c0_i32 = arith.constant 0 : i32
    %c0_i32_0 = arith.constant 0 : i32
    %c0_i32_1 = arith.constant 0 : i32
    return %c0_i32, %c0_i32_0 : i32, i32
  }
  func.func @transform_5(%arg0: i32, %arg1: i32) -> (i32, i32) {
    %c0_i32 = arith.constant 0 : i32
    %c0_i32_0 = arith.constant 0 : i32
    %c0_i32_1 = arith.constant 0 : i32
    return %c0_i32, %c0_i32_0 : i32, i32
  }
  func.func @transform_6(%arg0: i32, %arg1: i32) -> (i32, i32, i32) {
    %c0_i32 = arith.constant 0 : i32
    %c0_i32_0 = arith.constant 0 : i32
    return %arg0, %arg1, %c0_i32 : i32, i32, i32
  }
  func.func @transform_7(%arg0: i32, %arg1: i32) -> (i32, i32, i32) {
    %c0_i32 = arith.constant 0 : i32
    %c0_i32_0 = arith.constant 0 : i32
    return %arg0, %arg1, %c0_i32 : i32, i32, i32
  }
}

module attributes {stable_mosaic.version = 11 : i64} {
  func.func @_mha_kernel(%arg0: i32, %arg1: i32, %arg2: memref<1x8x32xbf16, #tpu.memory_space<vmem>>, %arg3: memref<32x32xbf16, #tpu.memory_space<vmem>>, %arg4: memref<32x32xbf16, #tpu.memory_space<vmem>>, %arg5: memref<32x32xbf16, #tpu.memory_space<vmem>>, %arg6: memref<32x32xbf16, #tpu.memory_space<vmem>>, %arg7: memref<1x32xf32, #tpu.memory_space<vmem>>, %arg8: memref<1x8x32xf32, #tpu.memory_space<vmem>>, %arg9: memref<1x8x8xf32, #tpu.memory_space<vmem>>, %arg10: memref<8x32xbf16, #tpu.memory_space<vmem>>, %arg11: memref<8x32xbf16, #tpu.memory_space<vmem>>, %arg12: memref<8x32xbf16, #tpu.memory_space<vmem>>, %arg13: memref<8x32xbf16, #tpu.memory_space<vmem>>) attributes {dimension_semantics = [#tpu.dimension_semantics<parallel>, #tpu.dimension_semantics<arbitrary>], iteration_bounds = array<i64: 2, 1>, scalar_prefetch = 0 : i64, scratch_operands = 4 : i64, tpu.core_type = #tpu.core_type<tc>, window_params = [{transform_indices = @transform_0, window_bounds = array<i64: 1, 8, 32>}, {pipeline_mode = #tpu.pipeline_mode<synchronous>, transform_indices = @transform_1, window_bounds = array<i64: 32, 32>}, {pipeline_mode = #tpu.pipeline_mode<synchronous>, transform_indices = @transform_2, window_bounds = array<i64: 32, 32>}, {pipeline_mode = #tpu.pipeline_mode<synchronous>, transform_indices = @transform_3, window_bounds = array<i64: 32, 32>}, {pipeline_mode = #tpu.pipeline_mode<synchronous>, transform_indices = @transform_4, window_bounds = array<i64: 32, 32>}, {pipeline_mode = #tpu.pipeline_mode<synchronous>, transform_indices = @transform_5, window_bounds = array<i64: 1, 32>}, {transform_indices = @transform_6, window_bounds = array<i64: 1, 8, 32>}, {transform_indices = @transform_7, window_bounds = array<i64: 1, 8, 8>}]} {
    %c0_i32 = arith.constant 0 : i32
    %0 = arith.cmpi eq, %arg1, %c0_i32 : i32
    %1 = arith.extui %0 : i1 to i32
    %c0_i32_0 = arith.constant 0 : i32
    %2 = arith.cmpi ne, %1, %c0_i32_0 : i32
    scf.if %2 {
      %c0_68 = arith.constant 0 : index
      %c0_69 = arith.constant 0 : index
      %c0_70 = arith.constant 0 : index
      %113 = vector.load %arg2[%c0_68, %c0_69, %c0_70] : memref<1x8x32xbf16, #tpu.memory_space<vmem>>, vector<1x8x32xbf16>
      %114 = vector.shape_cast %113 : vector<1x8x32xbf16> to vector<8x32xbf16>
      %c0_71 = arith.constant 0 : index
      %c0_72 = arith.constant 0 : index
      %115 = vector.load %arg4[%c0_71, %c0_72] : memref<32x32xbf16, #tpu.memory_space<vmem>>, vector<32x32xbf16>
      %cst_73 = arith.constant dense<0.000000e+00> : vector<8x32xf32>
      %116 = tpu.matmul %114, %115, %cst_73 {dimension_numbers = #tpu.dot_dimension_numbers<[1], [0], [0], [1], [0, 0, 1, 1], [], []>} : vector<8x32xbf16>, vector<32x32xbf16>, vector<8x32xf32> -> vector<8x32xf32>
      %117 = arith.truncf %116 : vector<8x32xf32> to vector<8x32xbf16>
      %c0_74 = arith.constant 0 : index
      %c0_75 = arith.constant 0 : index
      %118 = vector.load %arg11[%c0_74, %c0_75] : memref<8x32xbf16, #tpu.memory_space<vmem>>, vector<8x32xbf16>
      tpu.vector_store %arg11[%c0_74, %c0_75], %117 {strides = array<i32>} : memref<8x32xbf16, #tpu.memory_space<vmem>>, vector<8x32xbf16>,
      %c0_76 = arith.constant 0 : index
      %c0_77 = arith.constant 0 : index
      %119 = vector.load %arg5[%c0_76, %c0_77] : memref<32x32xbf16, #tpu.memory_space<vmem>>, vector<32x32xbf16>
      %cst_78 = arith.constant dense<0.000000e+00> : vector<8x32xf32>
      %120 = tpu.matmul %114, %119, %cst_78 {dimension_numbers = #tpu.dot_dimension_numbers<[1], [0], [0], [1], [0, 0, 1, 1], [], []>} : vector<8x32xbf16>, vector<32x32xbf16>, vector<8x32xf32> -> vector<8x32xf32>
      %121 = arith.truncf %120 : vector<8x32xf32> to vector<8x32xbf16>
      %c0_79 = arith.constant 0 : index
      %c0_80 = arith.constant 0 : index
      %122 = vector.load %arg12[%c0_79, %c0_80] : memref<8x32xbf16, #tpu.memory_space<vmem>>, vector<8x32xbf16>
      tpu.vector_store %arg12[%c0_79, %c0_80], %121 {strides = array<i32>} : memref<8x32xbf16, #tpu.memory_space<vmem>>, vector<8x32xbf16>,
    } else {
    }
    %c8_i32 = arith.constant 8 : i32
    %3 = arith.muli %arg1, %c8_i32 : i32
    %4 = tpu.assume_multiple %3, 8 : i32
    %c0 = arith.constant 0 : index
    %5 = arith.index_cast %4 : i32 to index
    %c0_1 = arith.constant 0 : index
    %6 = vector.load %arg2[%c0, %5, %c0_1] : memref<1x8x32xbf16, #tpu.memory_space<vmem>>, vector<1x8x32xbf16>
    %7 = vector.shape_cast %6 : vector<1x8x32xbf16> to vector<8x32xbf16>
    %c0_2 = arith.constant 0 : index
    %c0_3 = arith.constant 0 : index
    %8 = vector.load %arg3[%c0_2, %c0_3] : memref<32x32xbf16, #tpu.memory_space<vmem>>, vector<32x32xbf16>
    %cst = arith.constant dense<0.000000e+00> : vector<8x32xf32>
    %9 = tpu.matmul %7, %8, %cst {dimension_numbers = #tpu.dot_dimension_numbers<[1], [0], [0], [1], [0, 0, 1, 1], [], []>} : vector<8x32xbf16>, vector<32x32xbf16>, vector<8x32xf32> -> vector<8x32xf32>
    %cst_4 = arith.constant 0.176776692 : f32
    %10 = vector.broadcast %cst_4 : f32 to vector<8x32xf32>
    %11 = arith.mulf %9, %10 : vector<8x32xf32>
    %12 = arith.truncf %11 : vector<8x32xf32> to vector<8x32xbf16>
    %c0_5 = arith.constant 0 : index
    %c0_6 = arith.constant 0 : index
    %13 = vector.load %arg10[%c0_5, %c0_6] : memref<8x32xbf16, #tpu.memory_space<vmem>>, vector<8x32xbf16>
    tpu.vector_store %arg10[%c0_5, %c0_6], %12 {strides = array<i32>} : memref<8x32xbf16, #tpu.memory_space<vmem>>, vector<8x32xbf16>,
    %14 = tpu.iota {dimensions = array<i32: 0>} : vector<8x8xi32>
    %15 = vector.broadcast %4 : i32 to vector<8x8xi32>
    %16 = arith.addi %15, %14 : vector<8x8xi32>
    %17 = tpu.iota {dimensions = array<i32: 1>} : vector<8x8xi32>
    %18 = arith.cmpi sle, %17, %16 : vector<8x8xi32>
    %cst_7 = arith.constant 0.000000e+00 : f32
    %cst_8 = arith.constant -1.000000e+30 : f32
    %19 = vector.broadcast %cst_7 : f32 to vector<8x8xf32>
    %20 = vector.broadcast %cst_8 : f32 to vector<8x8xf32>
    %21 = arith.select %18, %19, %20 : vector<8x8xi1>, vector<8x8xf32>
    %c0_9 = arith.constant 0 : index
    %c0_10 = arith.constant 0 : index
    %22 = vector.load %arg10[%c0_9, %c0_10] : memref<8x32xbf16, #tpu.memory_space<vmem>>, vector<8x8xbf16>
    %c0_11 = arith.constant 0 : index
    %c0_12 = arith.constant 0 : index
    %23 = vector.load %arg11[%c0_11, %c0_12] : memref<8x32xbf16, #tpu.memory_space<vmem>>, vector<8x8xbf16>
    %c0_13 = arith.constant 0 : index
    %c0_14 = arith.constant 0 : index
    %24 = vector.load %arg12[%c0_13, %c0_14] : memref<8x32xbf16, #tpu.memory_space<vmem>>, vector<8x8xbf16>
    %cst_15 = arith.constant dense<0.000000e+00> : vector<8x8xf32>
    %25 = tpu.matmul %22, %23, %cst_15 {dimension_numbers = #tpu.dot_dimension_numbers<[1], [1], [0], [0], [0, 0, 1, 0], [], []>} : vector<8x8xbf16>, vector<8x8xbf16>, vector<8x8xf32> -> vector<8x8xf32>
    %26 = arith.addf %25, %21 : vector<8x8xf32>
    %cst_16 = arith.constant dense<0xFF800000> : vector<8xf32>
    %27 = vector.multi_reduction <maximumf>, %26, %cst_16 [1] : vector<8x8xf32> to vector<8xf32>
    %28 = vector.shape_cast %27 : vector<8xf32> to vector<8x1xf32>
    %29 = vector.broadcast %28 : vector<8x1xf32> to vector<8x8xf32>
    %30 = arith.subf %26, %29 : vector<8x8xf32>
    %31 = math.exp %30 : vector<8x8xf32>
    %cst_17 = arith.constant dense<0.000000e+00> : vector<8xf32>
    %32 = vector.multi_reduction <add>, %31, %cst_17 [1] : vector<8x8xf32> to vector<8xf32>
    %33 = vector.shape_cast %32 : vector<8xf32> to vector<8x1xf32>
    %cst_18 = arith.constant 1.000000e+00 : f32
    %34 = vector.broadcast %cst_18 : f32 to vector<8x1xf32>
    %35 = arith.divf %34, %33 : vector<8x1xf32>
    %36 = arith.truncf %31 : vector<8x8xf32> to vector<8x8xbf16>
    %cst_19 = arith.constant dense<0.000000e+00> : vector<8x8xf32>
    %37 = tpu.matmul %36, %24, %cst_19 {dimension_numbers = #tpu.dot_dimension_numbers<[1], [0], [0], [1], [0, 0, 1, 1], [], []>} : vector<8x8xbf16>, vector<8x8xbf16>, vector<8x8xf32> -> vector<8x8xf32>
    %38 = vector.broadcast %35 : vector<8x1xf32> to vector<8x8xf32>
    %39 = arith.mulf %37, %38 : vector<8x8xf32>
    %40 = arith.truncf %39 : vector<8x8xf32> to vector<8x8xbf16>
    %c0_20 = arith.constant 0 : index
    %c0_21 = arith.constant 0 : index
    %41 = vector.load %arg13[%c0_20, %c0_21] : memref<8x32xbf16, #tpu.memory_space<vmem>>, vector<8x8xbf16>
    tpu.vector_store %arg13[%c0_20, %c0_21], %40 {strides = array<i32>} : memref<8x32xbf16, #tpu.memory_space<vmem>>, vector<8x8xbf16>,
    %42 = vector.broadcast %35 : vector<8x1xf32> to vector<8x8xf32>
    %43 = arith.mulf %31, %42 : vector<8x8xf32>
    %c0_22 = arith.constant 0 : index
    %c0_23 = arith.constant 0 : index
    %c0_24 = arith.constant 0 : index
    %44 = vector.load %arg9[%c0_22, %c0_23, %c0_24] : memref<1x8x8xf32, #tpu.memory_space<vmem>>, vector<1x8x8xf32>
    %45 = vector.shape_cast %44 : vector<1x8x8xf32> to vector<8x8xf32>
    %46 = vector.shape_cast %43 : vector<8x8xf32> to vector<1x8x8xf32>
    tpu.vector_store %arg9[%c0_22, %c0_23, %c0_24], %46 {strides = array<i32>} : memref<1x8x8xf32, #tpu.memory_space<vmem>>, vector<1x8x8xf32>,
    %c0_25 = arith.constant 0 : index
    %c8 = arith.constant 8 : index
    %47 = vector.load %arg10[%c0_25, %c8] : memref<8x32xbf16, #tpu.memory_space<vmem>>, vector<8x8xbf16>
    %c0_26 = arith.constant 0 : index
    %c8_27 = arith.constant 8 : index
    %48 = vector.load %arg11[%c0_26, %c8_27] : memref<8x32xbf16, #tpu.memory_space<vmem>>, vector<8x8xbf16>
    %c0_28 = arith.constant 0 : index
    %c8_29 = arith.constant 8 : index
    %49 = vector.load %arg12[%c0_28, %c8_29] : memref<8x32xbf16, #tpu.memory_space<vmem>>, vector<8x8xbf16>
    %cst_30 = arith.constant dense<0.000000e+00> : vector<8x8xf32>
    %50 = tpu.matmul %47, %48, %cst_30 {dimension_numbers = #tpu.dot_dimension_numbers<[1], [1], [0], [0], [0, 0, 1, 0], [], []>} : vector<8x8xbf16>, vector<8x8xbf16>, vector<8x8xf32> -> vector<8x8xf32>
    %51 = arith.addf %50, %21 : vector<8x8xf32>
    %cst_31 = arith.constant dense<0xFF800000> : vector<8xf32>
    %52 = vector.multi_reduction <maximumf>, %51, %cst_31 [1] : vector<8x8xf32> to vector<8xf32>
    %53 = vector.shape_cast %52 : vector<8xf32> to vector<8x1xf32>
    %54 = vector.broadcast %53 : vector<8x1xf32> to vector<8x8xf32>
    %55 = arith.subf %51, %54 : vector<8x8xf32>
    %56 = math.exp %55 : vector<8x8xf32>
    %cst_32 = arith.constant dense<0.000000e+00> : vector<8xf32>
    %57 = vector.multi_reduction <add>, %56, %cst_32 [1] : vector<8x8xf32> to vector<8xf32>
    %58 = vector.shape_cast %57 : vector<8xf32> to vector<8x1xf32>
    %59 = tpu.reciprocal %58 {approx = true} : vector<8x1xf32> -> vector<8x1xf32>
    %60 = arith.truncf %56 : vector<8x8xf32> to vector<8x8xbf16>
    %cst_33 = arith.constant dense<0.000000e+00> : vector<8x8xf32>
    %61 = tpu.matmul %60, %49, %cst_33 {dimension_numbers = #tpu.dot_dimension_numbers<[1], [0], [0], [1], [0, 0, 1, 1], [], []>} : vector<8x8xbf16>, vector<8x8xbf16>, vector<8x8xf32> -> vector<8x8xf32>
    %62 = vector.broadcast %59 : vector<8x1xf32> to vector<8x8xf32>
    %63 = arith.mulf %61, %62 : vector<8x8xf32>
    %64 = arith.truncf %63 : vector<8x8xf32> to vector<8x8xbf16>
    %c0_34 = arith.constant 0 : index
    %c8_35 = arith.constant 8 : index
    %65 = vector.load %arg13[%c0_34, %c8_35] : memref<8x32xbf16, #tpu.memory_space<vmem>>, vector<8x8xbf16>
    tpu.vector_store %arg13[%c0_34, %c8_35], %64 {strides = array<i32>} : memref<8x32xbf16, #tpu.memory_space<vmem>>, vector<8x8xbf16>,
    %c0_36 = arith.constant 0 : index
    %c16 = arith.constant 16 : index
    %66 = vector.load %arg10[%c0_36, %c16] : memref<8x32xbf16, #tpu.memory_space<vmem>>, vector<8x8xbf16>
    %c0_37 = arith.constant 0 : index
    %c16_38 = arith.constant 16 : index
    %67 = vector.load %arg11[%c0_37, %c16_38] : memref<8x32xbf16, #tpu.memory_space<vmem>>, vector<8x8xbf16>
    %c0_39 = arith.constant 0 : index
    %c16_40 = arith.constant 16 : index
    %68 = vector.load %arg12[%c0_39, %c16_40] : memref<8x32xbf16, #tpu.memory_space<vmem>>, vector<8x8xbf16>
    %cst_41 = arith.constant dense<0.000000e+00> : vector<8x8xf32>
    %69 = tpu.matmul %66, %67, %cst_41 {dimension_numbers = #tpu.dot_dimension_numbers<[1], [1], [0], [0], [0, 0, 1, 0], [], []>} : vector<8x8xbf16>, vector<8x8xbf16>, vector<8x8xf32> -> vector<8x8xf32>
    %70 = arith.addf %69, %21 : vector<8x8xf32>
    %cst_42 = arith.constant dense<0xFF800000> : vector<8xf32>
    %71 = vector.multi_reduction <maximumf>, %70, %cst_42 [1] : vector<8x8xf32> to vector<8xf32>
    %72 = vector.shape_cast %71 : vector<8xf32> to vector<8x1xf32>
    %73 = vector.broadcast %72 : vector<8x1xf32> to vector<8x8xf32>
    %74 = arith.subf %70, %73 : vector<8x8xf32>
    %75 = math.exp %74 : vector<8x8xf32>
    %cst_43 = arith.constant dense<0.000000e+00> : vector<8xf32>
    %76 = vector.multi_reduction <add>, %75, %cst_43 [1] : vector<8x8xf32> to vector<8xf32>
    %77 = vector.shape_cast %76 : vector<8xf32> to vector<8x1xf32>
    %78 = tpu.reciprocal %77 {approx = true} : vector<8x1xf32> -> vector<8x1xf32>
    %79 = arith.truncf %75 : vector<8x8xf32> to vector<8x8xbf16>
    %cst_44 = arith.constant dense<0.000000e+00> : vector<8x8xf32>
    %80 = tpu.matmul %79, %68, %cst_44 {dimension_numbers = #tpu.dot_dimension_numbers<[1], [0], [0], [1], [0, 0, 1, 1], [], []>} : vector<8x8xbf16>, vector<8x8xbf16>, vector<8x8xf32> -> vector<8x8xf32>
    %81 = vector.broadcast %78 : vector<8x1xf32> to vector<8x8xf32>
    %82 = arith.mulf %80, %81 : vector<8x8xf32>
    %83 = arith.truncf %82 : vector<8x8xf32> to vector<8x8xbf16>
    %c0_45 = arith.constant 0 : index
    %c16_46 = arith.constant 16 : index
    %84 = vector.load %arg13[%c0_45, %c16_46] : memref<8x32xbf16, #tpu.memory_space<vmem>>, vector<8x8xbf16>
    tpu.vector_store %arg13[%c0_45, %c16_46], %83 {strides = array<i32>} : memref<8x32xbf16, #tpu.memory_space<vmem>>, vector<8x8xbf16>,
    %c0_47 = arith.constant 0 : index
    %c24 = arith.constant 24 : index
    %85 = vector.load %arg10[%c0_47, %c24] : memref<8x32xbf16, #tpu.memory_space<vmem>>, vector<8x8xbf16>
    %c0_48 = arith.constant 0 : index
    %c24_49 = arith.constant 24 : index
    %86 = vector.load %arg11[%c0_48, %c24_49] : memref<8x32xbf16, #tpu.memory_space<vmem>>, vector<8x8xbf16>
    %c0_50 = arith.constant 0 : index
    %c24_51 = arith.constant 24 : index
    %87 = vector.load %arg12[%c0_50, %c24_51] : memref<8x32xbf16, #tpu.memory_space<vmem>>, vector<8x8xbf16>
    %cst_52 = arith.constant dense<0.000000e+00> : vector<8x8xf32>
    %88 = tpu.matmul %85, %86, %cst_52 {dimension_numbers = #tpu.dot_dimension_numbers<[1], [1], [0], [0], [0, 0, 1, 0], [], []>} : vector<8x8xbf16>, vector<8x8xbf16>, vector<8x8xf32> -> vector<8x8xf32>
    %89 = arith.addf %88, %21 : vector<8x8xf32>
    %cst_53 = arith.constant dense<0xFF800000> : vector<8xf32>
    %90 = vector.multi_reduction <maximumf>, %89, %cst_53 [1] : vector<8x8xf32> to vector<8xf32>
    %91 = vector.shape_cast %90 : vector<8xf32> to vector<8x1xf32>
    %92 = vector.broadcast %91 : vector<8x1xf32> to vector<8x8xf32>
    %93 = arith.subf %89, %92 : vector<8x8xf32>
    %94 = math.exp %93 : vector<8x8xf32>
    %cst_54 = arith.constant dense<0.000000e+00> : vector<8xf32>
    %95 = vector.multi_reduction <add>, %94, %cst_54 [1] : vector<8x8xf32> to vector<8xf32>
    %96 = vector.shape_cast %95 : vector<8xf32> to vector<8x1xf32>
    %97 = tpu.reciprocal %96 {approx = true} : vector<8x1xf32> -> vector<8x1xf32>
    %98 = arith.truncf %94 : vector<8x8xf32> to vector<8x8xbf16>
    %cst_55 = arith.constant dense<0.000000e+00> : vector<8x8xf32>
    %99 = tpu.matmul %98, %87, %cst_55 {dimension_numbers = #tpu.dot_dimension_numbers<[1], [0], [0], [1], [0, 0, 1, 1], [], []>} : vector<8x8xbf16>, vector<8x8xbf16>, vector<8x8xf32> -> vector<8x8xf32>
    %100 = vector.broadcast %97 : vector<8x1xf32> to vector<8x8xf32>
    %101 = arith.mulf %99, %100 : vector<8x8xf32>
    %102 = arith.truncf %101 : vector<8x8xf32> to vector<8x8xbf16>
    %c0_56 = arith.constant 0 : index
    %c24_57 = arith.constant 24 : index
    %103 = vector.load %arg13[%c0_56, %c24_57] : memref<8x32xbf16, #tpu.memory_space<vmem>>, vector<8x8xbf16>
    tpu.vector_store %arg13[%c0_56, %c24_57], %102 {strides = array<i32>} : memref<8x32xbf16, #tpu.memory_space<vmem>>, vector<8x8xbf16>,
    %c0_58 = arith.constant 0 : index
    %c0_59 = arith.constant 0 : index
    %104 = vector.load %arg13[%c0_58, %c0_59] : memref<8x32xbf16, #tpu.memory_space<vmem>>, vector<8x32xbf16>
    %c0_60 = arith.constant 0 : index
    %c0_61 = arith.constant 0 : index
    %105 = vector.load %arg6[%c0_60, %c0_61] : memref<32x32xbf16, #tpu.memory_space<vmem>>, vector<32x32xbf16>
    %cst_62 = arith.constant dense<0.000000e+00> : vector<8x32xf32>
    %106 = tpu.matmul %104, %105, %cst_62 {dimension_numbers = #tpu.dot_dimension_numbers<[1], [0], [0], [1], [0, 0, 1, 1], [], []>} : vector<8x32xbf16>, vector<32x32xbf16>, vector<8x32xf32> -> vector<8x32xf32>
    %c0_63 = arith.constant 0 : index
    %c0_64 = arith.constant 0 : index
    %107 = vector.load %arg7[%c0_63, %c0_64] : memref<1x32xf32, #tpu.memory_space<vmem>>, vector<1x32xf32>
    %108 = vector.broadcast %107 : vector<1x32xf32> to vector<8x32xf32>
    %109 = arith.addf %106, %108 : vector<8x32xf32>
    %c0_65 = arith.constant 0 : index
    %c0_66 = arith.constant 0 : index
    %c0_67 = arith.constant 0 : index
    %110 = vector.load %arg8[%c0_65, %c0_66, %c0_67] : memref<1x8x32xf32, #tpu.memory_space<vmem>>, vector<1x8x32xf32>
    %111 = vector.shape_cast %110 : vector<1x8x32xf32> to vector<8x32xf32>
    %112 = vector.shape_cast %109 : vector<8x32xf32> to vector<1x8x32xf32>
    tpu.vector_store %arg8[%c0_65, %c0_66, %c0_67], %112 {strides = array<i32>} : memref<1x8x32xf32, #tpu.memory_space<vmem>>, vector<1x8x32xf32>,
    return
  }
  func.func @transform_0(%arg0: i32, %arg1: i32) -> (i32, i32, i32) {
    %c0_i32 = arith.constant 0 : i32
    %c0_i32_0 = arith.constant 0 : i32
    %c0_i32_1 = arith.constant 0 : i32
    return %arg0, %c0_i32, %c0_i32_0 : i32, i32, i32
  }
  func.func @transform_1(%arg0: i32, %arg1: i32) -> (i32, i32) {
    %c0_i32 = arith.constant 0 : i32
    %c0_i32_0 = arith.constant 0 : i32
    %c0_i32_1 = arith.constant 0 : i32
    return %c0_i32, %c0_i32_0 : i32, i32
  }
  func.func @transform_2(%arg0: i32, %arg1: i32) -> (i32, i32) {
    %c0_i32 = arith.constant 0 : i32
    %c0_i32_0 = arith.constant 0 : i32
    %c0_i32_1 = arith.constant 0 : i32
    return %c0_i32, %c0_i32_0 : i32, i32
  }
  func.func @transform_3(%arg0: i32, %arg1: i32) -> (i32, i32) {
    %c0_i32 = arith.constant 0 : i32
    %c0_i32_0 = arith.constant 0 : i32
    %c0_i32_1 = arith.constant 0 : i32
    return %c0_i32, %c0_i32_0 : i32, i32
  }
  func.func @transform_4(%arg0: i32, %arg1: i32) -> (i32, i32) {
    %c0_i32 = arith.constant 0 : i32
    %c0_i32_0 = arith.constant 0 : i32
    %c0_i32_1 = arith.constant 0 : i32
    return %c0_i32, %c0_i32_0 : i32, i32
  }
  func.func @transform_5(%arg0: i32, %arg1: i32) -> (i32, i32) {
    %c0_i32 = arith.constant 0 : i32
    %c0_i32_0 = arith.constant 0 : i32
    %c0_i32_1 = arith.constant 0 : i32
    return %c0_i32, %c0_i32_0 : i32, i32
  }
  func.func @transform_6(%arg0: i32, %arg1: i32) -> (i32, i32, i32) {
    %c0_i32 = arith.constant 0 : i32
    %c0_i32_0 = arith.constant 0 : i32
    return %arg0, %arg1, %c0_i32 : i32, i32, i32
  }
  func.func @transform_7(%arg0: i32, %arg1: i32) -> (i32, i32, i32) {
    %c0_i32 = arith.constant 0 : i32
    %c0_i32_0 = arith.constant 0 : i32
    return %arg0, %arg1, %c0_i32 : i32, i32, i32
  }
}

</mosaic_0001>

<bundles_post_ra>
// kernel: tpu_custom_call.1
= control target key start
LH: loop header
LB: loop body
LE: loop exit
PB: predicated region body
PF: predicated region fallthrough
CT: control target
= control target key end

     0   :  { %s1817_s0 = inlined_call_operand.hbm [shape: bf16[2,8,32], index: 0, kind: input, shape index: {}]   ;;  %s1818_s1 = inlined_call_operand.hbm [shape: bf16[32,32], index: 1, kind: input, shape index: {}]   ;;  %s1819_s2 = inlined_call_operand.hbm [shape: bf16[32,32], index: 2, kind: input, shape index: {}]   ;;  %s1820_s3 = inlined_call_operand.hbm [shape: bf16[32,32], index: 3, kind: input, shape index: {}]   ;;  %s1821_s4 = inlined_call_operand.hbm [shape: bf16[32,32], index: 4, kind: input, shape index: {}]   ;;  %s1822_s5 = inlined_call_operand.vmem [shape: f32[1,32], index: 5, kind: input, shape index: {}]   ;;  %s1823_s6 = inlined_call_operand.hbm [shape: f32[2,8,32], index: 6, kind: output, shape index: {0}]   ;;  %s1824_s7 = inlined_call_operand.hbm [shape: f32[2,8,8], index: 7, kind: output, shape index: {1}]  }
   0x1   :  { %1826 = sst [smem:[#allocation23_spill]] %s1818_s1 }
   0x2   :  { %1827 = sst [smem:[#allocation24_spill]] %s1819_s2 }
   0x3   :  { %13 = vsyncpa [#allocation7], 0 }
   0x4   :  { %15 = vsyncpa [#allocation7 + $0x1], 0 }
   0x5   :  { %16 = vsyncpa [#allocation10], 0 }
   0x6   :  { %17 = vsyncpa [#allocation13], 0 }
   0x7   :  { %18 = vsyncpa [#allocation8], 0 }
   0x8   :  { %20 = vsyncpa [#allocation8 + $0x1], 0 }
   0x9   :  { %21 = vsyncpa [#allocation17], 0 }
   0xa   :  { %23 = vsyncpa [#allocation17 + $0x1], 0  ;;  %s1577_s24 = smov 0   ;;  %s1579_s25 = smov 0  }
   0xb   :  { %s1581_s26 = smov 0   ;;  %s1583_s27 = smov 0  }
   0xc   :  { %s1585_s28 = smov 0   ;;  %s1587_s29 = smov 0  }
   0xd LB: > { %s1040_s30 = sadd.s32 4294967295, %s1522_s29   ;;  %p1042_p0 = scmp.ge.s32.totalorder %s1522_s29, 1  ;;  %s1522_s29 = sphi %s1587_s29, %s29_s29   ;;  %s1518_s28 = sphi %s1585_s28, %s1841_s28   ;;  %s1514_s27 = sphi %s1583_s27, %s1840_s27   ;;  %s1510_s26 = sphi %s1581_s26, %s1839_s26   ;;  %s1506_s25 = sphi %s1579_s25, %s1838_s25   ;;  %s1502_s24 = sphi %s1577_s24, %s1837_s24  }
   0xe   : > { %p1611_p1 = scmp.eq.s32.totalorder %s1040_s30, 0  ;;  %p233_p2 = scmp.lt.s32.totalorder %s1522_s29, 3 }
   0xf   : > { %s1829_s1 = sld [smem:[#allocation23_spill]]  ;;  %s1524_s13 = smov [#allocation9]  }
  0x10   : > { %p1619_p3 = pnand %p1042_p0, %p233_p2  ;;  %s246_s14 = sshll.u32 %s1524_s13, 4  ;;  %s247_s14 = int_to_ptr.vmem [resolvable:$true] %s246_s14 }
  0x11   : > { %p1047_p6 = scmp.ge.s32.totalorder %s1522_s29, 2  ;;  %s272_s18 = sshll.u32 %s1820_s3, 4  ;;  %s273_s18 = int_to_ptr.hbm [resolvable:$true] %s272_s18 }
  0x12   : > { %p1138_p4 = pneg %p1619_p3  ;;  %s1525_s19 = smov 64  }
  0x13   : > { %s1526_s20 = smov 4   ;;  %s1527_s21 = smov [#allocation12]  }
  0x14   : > { %p1627_p5 = pnand %p1138_p4, %p1611_p1  ;;  %s274_s22 = sshll.u32 %s1527_s21, 4  ;;  %s275_s22 = int_to_ptr.vmem [resolvable:$true] %s274_s22 }
  0x15   : > { %s244_s11 = sshll.u32 %s1829_s1, 4  ;;  %s1832_s2 = sld [smem:[#allocation24_spill]]  ;;  %s245_s11 = int_to_ptr.hbm [resolvable:$true] %s244_s11 }
  0x16   : > { %1141 = dma.hbm_to_vmem [thread:$0]  (!%p1627_p5), %s245_s11, 256, %s247_s14, [#allocation10], %s1525_s19, %s1525_s19, %s1526_s20  }
  0x17   : > { %1147 = dma.hbm_to_vmem [thread:$0]  (!%p1627_p5), %s273_s18, 256, %s275_s22, [#allocation13], %s1525_s19, %s1525_s19, %s1526_s20  }
  0x18   : > { %s286_s11 = sshll.u32 %s1821_s4, 4  ;;  %s1528_s14 = smov [#allocation11]   ;;  %s287_s11 = int_to_ptr.hbm [resolvable:$true] %s286_s11 }
  0x19   : > { %s260_s17 = sshll.u32 %s1528_s14, 4  ;;  %s1529_s21 = smov [#allocation14]   ;;  %s261_s17 = int_to_ptr.vmem [resolvable:$true] %s260_s17 }
  0x1a   : > { %s288_s23 = sshll.u32 %s1529_s21, 4  ;;  %s41_s18 = sadd.s32 1, %s1518_s28  ;;  %s289_s23 = int_to_ptr.vmem [resolvable:$true] %s288_s23 }
  0x1b   : > { %s258_s10 = sshll.u32 %s1832_s2, 4  ;;  %s1041_s22 = sadd.s32 4294967294, %s1522_s29   ;;  %s259_s10 = int_to_ptr.hbm [resolvable:$true] %s258_s10 }
  0x1c   : > { %1144 = dma.hbm_to_vmem [thread:$0]  (!%p1627_p5), %s259_s10, 256, %s261_s17, [#allocation10], %s1525_s19, %s1525_s19, %s1526_s20  }
  0x1d   : > { %1150 = dma.hbm_to_vmem [thread:$0]  (!%p1627_p5), %s287_s11, 256, %s289_s23, [#allocation13], %s1525_s19, %s1525_s19, %s1526_s20  }
  0x1e   : > { %p43_p7 = scmp.ge.s32.totalorder %s41_s18, 2  ;;  %s48_s9 = sadd.s32 1, %s1510_s26 }
  0x1f   : > { %p55_p8 = scmp.ne.s32.totalorder %s1510_s26, %s1506_s25  ;;  %p56_p9 = scmp.eq.s32.totalorder %s1522_s29, 0 }
  0x20   : > { %s1843_s18 = smov (%p43_p7, %s41_s18), 0  ;;  %p61_p10 = scmp.ne.s32.totalorder %s1506_s25, %s1502_s24 }
  0x21   : > { %s45_s10 = ssub.s32 %s1518_s28, %s1843_s18  ;;  %p192_p11 = scmp.eq.s32.totalorder %s1040_s30, 1 }
  0x22   : > { %p46_p12 = scmp.eq.s32.totalorder %s45_s10, 0  ;;  %p1665_p13 = por %p1611_p1, %p61_p10 }
  0x23   : > { %p1669_p0 = por %p192_p11, %p55_p8  ;;  %p198_p2 = scmp.eq.s32.totalorder %s1041_s22, 1 }
  0x24   : > { %s1674_s20 = scalar_select %p46_p12, %s1510_s26, %s48_s9  }
  0x25   : > { %p57_p4 = por %p56_p9, %p55_p8  ;;  %p1676_p5 = por %p198_p2, %p61_p10 }
  0x26   : > { %s305_s16 = sand.u32 1, %s1510_s26   ;;  %s1049_s30 = sshll.u32 %s1518_s28, 2 }
  0x27   : > { %p1166_p7 = scmp.lt.s32.totalorder %s1522_s29, 2  ;;  %s1048_s11 = sshll.u32 %s305_s16, 2 }
  0x28   : > { %s313_s21 = scalar_lea.hbm %s1817_s0, %s1049_s30  ;;  %s309_s10 = scalar_lea.vmem [#allocation6], %s1048_s11 }
  0x29   : > { %s315_s23 = sshll.u32 %s313_s21, 4  ;;  %s317_s1 = sshll.u32 %s309_s10, 4  ;;  %s316_s23 = int_to_ptr.hbm [resolvable:$true] %s315_s23  ;;  %s318_s1 = int_to_ptr.vmem [resolvable:$true] %s317_s1 }
  0x2a   : > { %p1152_p11 = pnand %p1166_p7, %p57_p4  ;;  %s306_s22 = scalar_lea.sflag [#allocation7], %s305_s16 }
  0x2b   : > { %326 = sbr.rel (%p1619_p3) target bundleno = 993 (0x3e1), region = 44  ;;  %s1689_s9 = sand.u32 (!%p1619_p3), 1, %s1506_s25  }
  0x2c   : > { %1154 = dma.hbm_to_vmem [thread:$0]  (!%p1152_p11), %s316_s23, 64, %s318_s1, %s306_s22  }
  0x2d   : > { %s1051_s2 = sshll.u32 (!%p1619_p3), %s1689_s9, 2  ;;  %s329_s14 = scalar_lea.sflag (!%p1619_p3), [#allocation7], %s1689_s9 }
  0x2e   : > { %s332_s30 = scalar_lea.vmem (!%p1619_p3), [#allocation6], %s1051_s2 }
  0x30   : > { %1481 = dma.done.wait (%p1665_p13), %s329_s14, 64  }
  0x31   : > { %1483 = vsyncadd (%p1665_p13), %s329_s14, 4294967232 }
  0x32   : > { %1485 = dma.done.wait (%p1611_p1), [#allocation10], 512  }
  0x33   : > { %1487 = vsyncadd (%p1611_p1), [#allocation10], 4294966784 }
  0x34   : > { %1489 = dma.done.wait (%p1611_p1), [#allocation13], 512  }
  0x35   : > { %1491 = vsyncadd (%p1611_p1), [#allocation13], 4294966784  ;;  %v1109_v0 = vld [vmem:[#allocation11 + $0x8] sm:$0xff]  ;;  %v1113_v1 = vld [vmem:[#allocation9 + $0x8] sm:$0xff]  ;;  %vm411_vm0 = vcmask 261120   ;;  %vm429_vm1 = vcmask 257024   ;;  %v505_v44 = vlaneseq }
  0x36   : > { %421 = vmatpush.bf16.msra.mxu0 %v1109_v0  ;;  %494 = vmatpush.bf16.msra.mxu2 %v1113_v1  ;;  %v1108_v2 = vld [vmem:[#allocation11] sm:$0xff]  ;;  %v1112_v3 = vld [vmem:[#allocation9] sm:$0xff]  ;;  %v394_v4 = vld [vmem:[%s332_s30] sm:$0xf]  ;;  %vm516_vm2 = vcmask 64512   ;;  %s1530_s1 = smov 112  }
  0x37   : > { %v467_v5 = vld [vmem:[%s332_s30] sm:$0xf]  ;;  %v1111_v6 = vld [vmem:[#allocation12 + $0x8] sm:$0xff]  ;;  %v1110_v9 = vld [vmem:[#allocation12] sm:$0xff]  ;;  %s1531_s2 = smov 120   ;;  %s1532_s8 = smov 104  }
  0x38   : > { %453 = vmatpush.bf16.msra.mxu1 %v1111_v6  ;;  %v506_v47 = vshrl.u32 %v505_v44, 7  ;;  %v510_v48 = vand.u32 127, %v505_v44  ;;  %vm564_vm3 = vcmask 1043456   ;;  %v1533_v53 = vmov -1e+30   ;;  %s1825_s12 = sshll.u32 %s1689_s9, 3 }
  0x39   : > { %vm583_vm9 = vcmask 60416   ;;  %s1753_s15 = scalar_lea.vmem [#allocation16], %s1825_s12  ;;  %s1534_s16 = smov 8   ;;  %vm660_vm10 = vcmask 126016   ;;  %vm735_vm11 = vcmask 191616   ;;  %vm810_vm12 = vcmask 257216  }
  0x3a   : > { %422 = vmatpush.bf16.msra.mxu0 %v1108_v2  ;;  %495 = vmatpush.bf16.msra.mxu2 %v1112_v3  ;;  %vm511_vm4 = vcmp.le.s32.totalorder %v510_v48, %v506_v47  ;;  %s1535_s11 = smov 16   ;;  %s1536_s17 = smov 24  }
  0x3b   : > { %v512_v54 = vsel %vm511_vm4, 0.0, %v1533_v53  ;;  %s1104_s21 = sshll.u32 %s1514_s27, 3  ;;  %s884_s14 = sshll.u32 %s1753_s15, 4  ;;  %s885_s14 = int_to_ptr.vmem [resolvable:$true] %s884_s14 }
  0x3c   : > { %454 = vmatpush.bf16.msra.mxu1 %v1110_v9  ;;  %s882_s22 = scalar_lea.hbm %s1824_s7, %s1104_s21  ;;  %s1420_s27 = scalar_lea.hbm %s1824_s7, 16 }
  0x3d   : > { %1066 = vmatmul.msk.bf16.vlgmr.msra.gmra.mxu0 %vm411_vm0, %v394_v4  ;;  %1084 = vmatmul.msk.bf16.vlgmr.msra.gmra.mxu2 %vm411_vm0, %v467_v5  ;;  %s886_s30 = sshll.u32 %s882_s22, 4  ;;  %s887_s30 = int_to_ptr.hbm [resolvable:$true] %s886_s30 }
  0x3f   : > { %1075 = vmatmul.msk.bf16.vlgmr.msra.gmra.mxu1 %vm411_vm0, %v394_v4 }
  0xba   : > { %v424_v7 = vpop.f32.mrf.mxu0 }
  0xbb   : > { %v428_v8 = vpack.c.bf16 %v424_v7, %v424_v7 }
  0xbc   : > { %v456_v40 = vpop.f32.mrf.mxu1 }
  0xbd   : > { %430 = vst.msk [vmem:[#allocation3] sm:$0xf] %vm429_vm1, %v428_v8  ;;  %v460_v41 = vpack.c.bf16 %v456_v40, %v456_v40 }
  0xbf   : > { %461 = vst.msk [vmem:[#allocation4] sm:$0xf] %vm429_vm1, %v460_v41 }
  0xc0   : > { %v497_v10 = vpop.f32.mrf.mxu2 }
  0xc1   : > { %v501_v11 = vmul.f32 0.17677669, %v497_v10 }
  0xc2   : > { %v426_v12 = vpop.f32.mrf.mxu0 }
  0xc3   : > { %v502_v13 = vpack.c.bf16 %v501_v11, %v501_v11 }
  0xc4   : > { %v514_v14 = vld [vmem:[#allocation3] sm:$0xf]  ;;  %v458_v49 = vpop.f32.mrf.mxu1 }
  0xc5   : > { %v663_v15 = vld [vmem:[#allocation3] sm:$0xf]  ;;  %504 = vst.msk [vmem:[#allocation2] sm:$0xf] %vm429_vm1, %v502_v13  ;;  %v521_v17 = vsel %vm516_vm2, %v514_v14, 0 }
  0xc6   : > { %v588_v16 = vld [vmem:[#allocation3] sm:$0xf]  ;;  %v671_v18 = vunpack.c.l.b16 %v663_v15  ;;  %530 = vmatpush.bf16.xpose.msra.mxu3 %v521_v17  ;;  %v515_v50 = vld [vmem:[#allocation4] sm:$0xf] }
  0xc7   : > { %v596_v19 = vunpack.c.l.b16 %v588_v16  ;;  %v738_v23 = vld [vmem:[#allocation3] sm:$0xf]  ;;  %v566_v51 = vsel %vm564_vm3, %v515_v50, 0  ;;  %v589_v52 = vld [vmem:[#allocation4] sm:$0xf] }
  0xc8   : > { %v672_v20 = vpack.c.b16 %v671_v18, %v671_v18  ;;  %v499_v22 = vpop.f32.mrf.mxu2  ;;  %v746_v24 = vunpack.c.l.b16 %v738_v23  ;;  %575 = vmatpush.bf16.msrb.mxu0 %v566_v51  ;;  %v631_v55 = vunpack.c.l.b16 %v589_v52  ;;  %v739_v62 = vld [vmem:[#allocation4] sm:$0xf] }
  0xc9   : > { %v597_v21 = vpack.c.b16 %v596_v19, %v596_v19  ;;  %v781_v63 = vunpack.c.l.b16 %v739_v62  ;;  %v664_v23 = vld [vmem:[#allocation4] sm:$0xf] }
  0xca   : > { %673 = vrot.lane.b32.xlu1 %v672_v20, %s1530_s1  ;;  %v747_v31 = vpack.c.b16 %v746_v24, %v746_v24  ;;  %v632_v57 = vpack.c.b16 %v631_v55, %v631_v55  ;;  %v706_v24 = vunpack.c.l.b16 %v664_v23 }
  0xcb   : > { %598 = vrot.lane.b32.xlu0 %v597_v21, %s1531_s2  ;;  %v782_v0 = vpack.c.b16 %v781_v63, %v781_v63 }
  0xcc   : > { %v513_v25 = vld [vmem:[#allocation2] sm:$0xf] }
  0xcd   : > { %v662_v26 = vld [vmem:[#allocation2] sm:$0xf]  ;;  %1085 = vmatmul.msk.bf16.vlgmr.msra.gmra.mxu3 %vm516_vm2, %v513_v25  ;;  %v707_v25 = vpack.c.b16 %v706_v24, %v706_v24 }
  0xce   : > { %v587_v27 = vld [vmem:[#allocation2] sm:$0xf]  ;;  %v666_v28 = vunpack.c.l.b16 %v662_v26 }
  0xcf   : > { %v591_v29 = vunpack.c.l.b16 %v587_v27  ;;  %v737_v33 = vld [vmem:[#allocation2] sm:$0xf] }
  0xd0   : > { %v667_v30 = vpack.c.b16 %v666_v28, %v666_v28  ;;  %v741_v34 = vunpack.c.l.b16 %v737_v33 }
  0xd1   : > { %v592_v32 = vpack.c.b16 %v591_v29, %v591_v29 }
  0xd2   : > { %668 = vrot.lane.b32.xlu2 %v667_v30, %s1530_s1  ;;  %748 = vrot.lane.b32.xlu1 %v747_v31, %s1532_s8  ;;  %v742_v35 = vpack.c.b16 %v741_v34, %v741_v34 }
  0xd3   : > { %593 = vrot.lane.b32.xlu0 %v592_v32, %s1531_s2 }
  0xda   : > { %743 = vrot.lane.b32.xlu2 %v742_v35, %s1532_s8 }
  0xe2   : > { %633 = vrot.lane.b32.xlu2 %v632_v57, %s1531_s2  ;;  %s1414_s2 = sshra.s32 %s887_s30, 4  ;;  %s1415_s2 = int_to_ptr.hbm [resolvable:$true] %s1414_s2 }
  0xe3   : > { %p1421_p9 = scmp.lt.s32.totalorder %s1415_s2, %s1824_s7 }
 0x12c   : > { %v669_v42 = vpop.permute.xlu2 %668 }
 0x134   : > { %v744_v60 = vpop.permute.xlu2 %743 }
 0x13c   : > { %v674_v36 = vpop.permute.xlu1 %673  ;;  %v634_v11 = vpop.permute.xlu2 %633 }
 0x13d   : > { %v599_v37 = vpop.permute.xlu0 %598  ;;  %v679_v39 = vsel %vm516_vm2, %v674_v36, 0  ;;  %v639_v13 = vsel %vm564_vm3, %v634_v11, 0 }
 0x13e   : > { %v604_v38 = vsel %vm516_vm2, %v599_v37, 0  ;;  %688 = vmatpush.bf16.xpose.msrb.mxu3 %v679_v39  ;;  %648 = vmatpush.bf16.msrb.mxu2 %v639_v13 }
 0x13f   : > { %613 = vmatpush.bf16.xpose.msrb.mxu1 %v604_v38 }
 0x144   : > { %v749_v43 = vpop.permute.xlu1 %748 }
 0x145   : > { %v754_v45 = vsel %vm516_vm2, %v749_v43, 0  ;;  %v594_v46 = vpop.permute.xlu0 %593  ;;  %1089 = vmatmul.msk.bf16.vlgmr.msrb.gmra.mxu3 %vm516_vm2, %v669_v42 }
 0x146   : > { %1087 = vmatmul.msk.bf16.vlgmr.msrb.gmra.mxu1 %vm516_vm2, %v594_v46 }
 0x147   : > { %763 = vmatpush.bf16.xpose.msra.mxu1 %v754_v45 }
 0x150   : > { %v532_v56 = vpop.f32.mrf.mxu3 }
 0x151   : > { %v533_v58 = vadd.f32 %v532_v56, %v512_v54 }
 0x153   : > { %v536_v59 = vsel %vm516_vm2, %v533_v58, -inf }
 0x154   : > { %537 = vmax.xlane.f32.xlu1 %v536_v59 }
 0x156   : > { %1091 = vmatmul.msk.bf16.vlgmr.msra.gmra.mxu1 %vm516_vm2, %v744_v60 }
 0x158   : > { %v534_v61 = vpop.f32.mrf.mxu3 }
 0x16d   : > { %783 = vrot.lane.b32.xlu1 %v782_v0, %s1532_s8  ;;  %s1416_s8 = scalar_lea.hbm %s1415_s2, 8 }
 0x16e   : > { %p1417_p1 = scmp.ne.s32.totalorder %s1415_s2, %s1416_s8  ;;  %p1422_p10 = scmp.lt.s32.totalorder %s1420_s27, %s1416_s8 }
 0x170   : > { %p1418_p3 = pnand %p1417_p1, %p1669_p0  ;;  %p1423_p12 = por %p1422_p10, %p1421_p9 }
 0x172   : > { %p1419_p8 = pneg %p1418_p3 }
 0x174   : > { %p1424_p13 = pnand %p1423_p12, %p1419_p8 }
 0x1c3   : > { %v615_v1 = vpop.f32.mrf.mxu1 }
 0x1c4   : > { %v616_v2 = vadd.f32 %v615_v1, %v512_v54 }
 0x1c6   : > { %v619_v3 = vsel %vm516_vm2, %v616_v2, -inf }
 0x1c7   : > { %620 = vmax.xlane.f32.xlu0 %v619_v3  ;;  %v538_v5 = vpop.xlane.xlu1 %537 }
 0x1c8   : > { %v690_v4 = vpop.f32.mrf.mxu3  ;;  %v539_v6 = vsub.f32 %v533_v58, %v538_v5 }
 0x1c9   : > { %v691_v7 = vadd.f32 %v690_v4, %v512_v54 }
 0x1ca   : > { %v540_v8 = vmul.f32 1.442695, %v539_v6 }
 0x1cb   : > { %v617_v9 = vpop.f32.mrf.mxu1  ;;  %v694_v10 = vsel %vm516_vm2, %v691_v7, -inf }
 0x1cc   : > { %1234 = vpow2.f32 %v540_v8 }
 0x1cf   : > { %695 = vmax.xlane.f32.xlu0 %v694_v10 }
 0x1d0   : > { %v692_v12 = vpop.f32.mrf.mxu3 }
 0x1d2   : > { %v1732_v14 = vpop.eup %1234 }
 0x1d3   : > { %v765_v15 = vpop.f32.mrf.mxu1  ;;  %v542_v17 = vsel %vm516_vm2, %v1732_v14, 0.0  ;;  %v560_v18 = vpack.c.bf16 %v1732_v14, %v1732_v14 }
 0x1d4   : > { %v766_v16 = vadd.f32 %v765_v15, %v512_v54  ;;  %543 = vadd.xlane.f32.xlu1 %v542_v17  ;;  %v1115_v17 = vld [vmem:[#allocation14 + $0x8] sm:$0xff] }
 0x1d5   : > { %1086 = vmatmul.msk.bf16.vlgmr.msrb.gmra.mxu0 %vm516_vm2, %v560_v18  ;;  %842 = vmatpush.bf16.msra.mxu3 %v1115_v17  ;;  %v1114_v18 = vld [vmem:[#allocation14] sm:$0xff] }
 0x1d6   : > { %v769_v19 = vsel %vm516_vm2, %v766_v16, -inf }
 0x1d7   : > { %770 = vmax.xlane.f32.xlu2 %v769_v19 }
 0x1d9   : > { %843 = vmatpush.bf16.msra.mxu3 %v1114_v18 }
 0x1db   : > { %v767_v20 = vpop.f32.mrf.mxu1 }
 0x1df   : > { %v784_v21 = vpop.permute.xlu1 %783 }
 0x1e0   : > { %v789_v22 = vsel %vm564_vm3, %v784_v21, 0 }
 0x1e1   : > { %798 = vmatpush.bf16.msra.mxu2 %v789_v22 }
 0x1ef   : > { %708 = vrot.lane.b32.xlu2 %v707_v25, %s1530_s1  ;;  %s856_s1 = scalar_lea.sflag [#allocation17], %s1689_s9 }
 0x23a   : > { %v621_v26 = vpop.xlane.xlu0 %620 }
 0x23b   : > { %v622_v27 = vsub.f32 %v616_v2, %v621_v26 }
 0x23d   : > { %v623_v28 = vmul.f32 1.442695, %v622_v27 }
 0x23f   : > { %1236 = vpow2.f32 %v623_v28 }
 0x242   : > { %v696_v29 = vpop.xlane.xlu0 %695 }
 0x243   : > { %v697_v30 = vsub.f32 %v691_v7, %v696_v29 }
 0x245   : > { %v1237_v31 = vpop.eup %1236  ;;  %v698_v32 = vmul.f32 1.442695, %v697_v30 }
 0x246   : > { %v625_v33 = vsel %vm516_vm2, %v1237_v31, 0.0  ;;  %v629_v34 = vpack.c.bf16 %v1237_v31, %v1237_v31 }
 0x247   : > { %1238 = vpow2.f32 %v698_v32  ;;  %626 = vadd.xlane.f32.xlu0 %v625_v33  ;;  %v544_v35 = vpop.xlane.xlu1 %543 }
 0x248   : > { %1088 = vmatmul.msk.bf16.vlgmr.msrb.gmra.mxu2 %vm516_vm2, %v629_v34  ;;  %1240 = vrcp.f32 %v544_v35  ;;  %v556_v45 = vand.u32 2147483648, %v544_v35  ;;  %v554_v49 = vand.u32 2147483647, %v544_v35  ;;  %vm550_vm6 = vweird.f32 %v544_v35 }
 0x24a   : > { %v771_v36 = vpop.xlane.xlu2 %770  ;;  %v557_v55 = vor.u32 1.1754944e-38, %v556_v45  ;;  %vm555_vm8 = vcmp.eq.f32.partialorder %v554_v49, 8.507059e+37 }
 0x24b   : > { %v772_v37 = vsub.f32 %v766_v16, %v771_v36 }
 0x24d   : > { %v1239_v38 = vpop.eup %1238  ;;  %v773_v39 = vmul.f32 1.442695, %v772_v37 }
 0x24e   : > { %v700_v40 = vsel %vm516_vm2, %v1239_v38, 0.0  ;;  %v1241_v41 = vpop.eup %1240  ;;  %v704_v51 = vpack.c.bf16 %v1239_v38, %v1239_v38 }
 0x24f   : > { %1242 = vpow2.f32 %v773_v39  ;;  %701 = vadd.xlane.f32.xlu0 %v700_v40  ;;  %v546_v42 = vmul.f32 %v1241_v41, %v544_v35  ;;  %vm551_vm5 = vweird.f32 %v1241_v41 }
 0x250   : > { %vm552_vm7 = vmor %vm550_vm6, %vm551_vm5 }
 0x251   : > { %v547_v43 = vsub.f32 1.0, %v546_v42 }
 0x252   : > { %v709_v44 = vpop.permute.xlu2 %708  ;;  %v577_v47 = vpop.f32.mrf.mxu0 }
 0x253   : > { %v714_v46 = vsel %vm564_vm3, %v709_v44, 0  ;;  %v548_v48 = vmul.f32 %v1241_v41, %v547_v43 }
 0x254   : > { %723 = vmatpush.bf16.msra.mxu0 %v714_v46 }
 0x255   : > { %v1243_v50 = vpop.eup %1242  ;;  %v549_v53 = vadd.f32 %v1241_v41, %v548_v48 }
 0x256   : > { %v779_v52 = vpack.c.bf16 %v1243_v50, %v1243_v50  ;;  %v775_v54 = vsel %vm516_vm2, %v1243_v50, 0.0 }
 0x257   : > { %776 = vadd.xlane.f32.xlu0 %v775_v54  ;;  %1090 = vmatmul.msk.bf16.vlgmr.msra.gmra.mxu0 %vm516_vm2, %v704_v51  ;;  %v553_v56 = vsel %vm552_vm7, %v1241_v41, %v549_v53 }
 0x258   : > { %1092 = vmatmul.msk.bf16.vlgmr.msra.gmra.mxu2 %vm516_vm2, %v779_v52  ;;  %v558_v57 = vsel %vm555_vm8, %v557_v55, %v553_v56 }
 0x259   : > { %v581_v58 = vmul.f32 %v577_v47, %v558_v57  ;;  %v585_v59 = vmul.f32 %v1732_v14, %v558_v57 }
 0x25a   : > { %v579_v60 = vpop.f32.mrf.mxu0 }
 0x25b   : > { %v582_v61 = vpack.c.bf16 %v581_v58, %v581_v58  ;;  %586 = vst.msk [vmem:[%s1753_s15] sm:$0xff] %vm516_vm2, %v585_v59 }
 0x25d   : > { %584 = vst.msk [vmem:[#allocation5] sm:$0xf] %vm583_vm9, %v582_v61 }
 0x2ba   : > { %v627_v62 = vpop.xlane.xlu0 %626 }
 0x2bb   : > { %1244 = vrcp.f32 %v627_v62 }
 0x2c1   : > { %v1245_v0 = vpop.eup %1244 }
 0x2c2   : > { %v702_v63 = vpop.xlane.xlu0 %701 }
 0x2c3   : > { %1246 = vrcp.f32 %v702_v63 }
 0x2c9   : > { %v1247_v6 = vpop.eup %1246 }
 0x2ca   : > { %v777_v4 = vpop.xlane.xlu0 %776 }
 0x2cb   : > { %v650_v1 = vpop.f32.mrf.mxu2  ;;  %1248 = vrcp.f32 %v777_v4 }
 0x2cc   : > { %v654_v2 = vmul.f32 %v1245_v0, %v650_v1 }
 0x2ce   : > { %v655_v3 = vpack.c.bf16 %v654_v2, %v654_v2 }
 0x2d0   : > { %657 = vrot.lane.b32.xlu2 %v655_v3, %s1534_s16 }
 0x2d1   : > { %v1249_v10 = vpop.eup %1248 }
 0x2d3   : > { %v652_v5 = vpop.f32.mrf.mxu2 }
 0x2d4   : > { %v725_v7 = vpop.f32.mrf.mxu0 }
 0x2d5   : > { %v729_v8 = vmul.f32 %v1247_v6, %v725_v7 }
 0x2d7   : > { %v730_v9 = vpack.c.bf16 %v729_v8, %v729_v8 }
 0x2d9   : > { %732 = vrot.lane.b32.xlu0 %v730_v9, %s1535_s11 }
 0x2db   : > { %v800_v11 = vpop.f32.mrf.mxu2 }
 0x2dc   : > { %v804_v12 = vmul.f32 %v1249_v10, %v800_v11  ;;  %v727_v13 = vpop.f32.mrf.mxu0 }
 0x2de   : > { %v805_v14 = vpack.c.bf16 %v804_v12, %v804_v12 }
 0x2e0   : > { %807 = vrot.lane.b32.xlu2 %v805_v14, %s1536_s17 }
 0x2e3   : > { %v802_v15 = vpop.f32.mrf.mxu2 }
 0x32a   : > { %v658_v16 = vpop.permute.xlu2 %657 }
 0x32b   : > { %661 = vst.msk [vmem:[#allocation5] sm:$0xf] %vm660_vm10, %v658_v16 }
 0x33a   : > { %v808_v20 = vpop.permute.xlu2 %807 }
 0x34b   : > { %v733_v19 = vpop.permute.xlu0 %732 }
 0x34c   : > { %736 = vst.msk [vmem:[#allocation5] sm:$0xf] %vm735_vm11, %v733_v19 }
 0x34d   : > { %811 = vst.msk [vmem:[#allocation5] sm:$0xf] %vm810_vm12, %v808_v20 }
 0x354   : > { %v812_v21 = vld [vmem:[#allocation5] sm:$0xf] }
 0x355   : > { %1101 = vmatmul.msk.bf16.vlgmr.msra.gmra.mxu3 %vm411_vm0, %v812_v21 }
 0x356   : > { %1427 = shalt.err (!%p1424_p13)
}
 0x357   : > { %1135 = dma.vmem_to_hbm [thread:$0]  (%p1669_p0), %s885_s14, 128, %s887_s30, %s856_s1   ;;  %v1233_v22 = vld [vmem:[%s1822_s5] ss:$0 sm:$0xff] }
 0x358   : > { %s867_s10 = scalar_lea.hbm %s1823_s6, %s1104_s21  ;;  %s1836_s12 = sshll.u32 %s1689_s9, 3 }
 0x359   : > { %s381_s2 = scalar_lea.vmem [#allocation15], %s1836_s12  ;;  %s871_s11 = sshll.u32 %s867_s10, 4  ;;  %s872_s11 = int_to_ptr.hbm [resolvable:$true] %s871_s11 }
 0x35a   : > { %s869_s8 = sshll.u32 %s381_s2, 4  ;;  %s851_s14 = scalar_lea.sflag [#allocation8], %s1689_s9  ;;  %s870_s8 = int_to_ptr.vmem [resolvable:$true] %s869_s8 }
 0x35b   : > { %s1442_s30 = sshra.s32 %s872_s11, 4  ;;  %s1448_s17 = scalar_lea.hbm %s1823_s6, 16  ;;  %s1443_s30 = int_to_ptr.hbm [resolvable:$true] %s1442_s30 }
 0x35c   : > { %s1444_s1 = scalar_lea.hbm %s1443_s30, 8  ;;  %p1449_p11 = scmp.lt.s32.totalorder %s1443_s30, %s1823_s6 }
 0x35d   : > { %p1445_p2 = scmp.ne.s32.totalorder %s1443_s30, %s1444_s1  ;;  %p1450_p1 = scmp.lt.s32.totalorder %s1448_s17, %s1444_s1 }
 0x35f   : > { %p1446_p4 = pnand %p1445_p2, %p1669_p0  ;;  %p1451_p3 = por %p1450_p1, %p1449_p11 }
 0x361   : > { %p1447_p7 = pneg %p1446_p4 }
 0x363   : > { %p1452_p8 = pnand %p1451_p3, %p1447_p7 }
 0x3d8   : > { %v845_v23 = vpop.f32.mrf.mxu3 }
 0x3d9   : > { %v846_v24 = vadd.f32 %v1233_v22, %v845_v23 }
 0x3db   : > { %849 = vst.msk [vmem:[%s381_s2] sm:$0xff] %vm411_vm0, %v846_v24 }
 0x3dc   : > { %1455 = shalt.err (!%p1452_p8)
}
 0x3dd   : > { %1134 = dma.vmem_to_hbm [thread:$0]  (%p1669_p0), %s870_s8, 128, %s872_s11, %s851_s14  }
 0x3e0   : > { %v847_v25 = vpop.f32.mrf.mxu3 }
 0x3e1 PF: > { %s898_s9 = sand.u32 1, %s1502_s24   ;;  %p1156_p9 = pnand %p1047_p6, %p1676_p5 }
 0x3e2   : > { %s899_s10 = scalar_lea.sflag [#allocation8], %s898_s9 }
 0x3e3   : > { %p1157_p10 = pneg %p1156_p9 }
 0x3e5   : > { %1493 = dma.done.wait (%p1157_p10), %s899_s10, 128  }
 0x3e6   : > { %1495 = vsyncadd (%p1157_p10), %s899_s10, 4294967168  ;;  %s909_s22 = scalar_lea.sflag [#allocation17], %s898_s9 }
 0x3e7   : > { %1497 = dma.done.wait (%p1157_p10), %s909_s22, 128  }
 0x3e8   : > { %1499 = vsyncadd (%p1157_p10), %s909_s22, 4294967168  ;;  %s29_s29 = sadd.s32 1, %s1522_s29   ;;  %s1837_s24 = smov %s1506_s25 }
 0x3e9   : > { %p26_p12 = scmp.ge.s32.totalorder %s29_s29, 4   ;;  %s1838_s25 = smov %s1510_s26 }
 0x3ea   : > { %s1839_s26 = smov %s1674_s20  ;;  %s1840_s27 = smov %s1518_s28 }
 0x3eb   : > { %s1841_s28 = smov %s1843_s18  ;;  %28 = sbr.rel (!%p26_p12) target bundleno = 13 (0xd), region = 127 }
 0x3f0   :  { %915 = vsyncpa [#allocation7], 1 }
 0x3f1   :  { %917 = vsyncpa [#allocation7 + $0x1], 1 }
 0x3f2   :  { %918 = vsyncpa [#allocation10], 1 }
 0x3f3   :  { %919 = vsyncpa [#allocation13], 1 }
 0x3f4   :  { %920 = vsyncpa [#allocation8], 1 }
 0x3f5   :  { %922 = vsyncpa [#allocation8 + $0x1], 1 }
 0x3f6   :  { %923 = vsyncpa [#allocation17], 1 }
 0x3f7   :  { %925 = vsyncpa [#allocation17 + $0x1], 1 }

// kernel: tpu_custom_call.1
= control target key start
LH: loop header
LB: loop body
LE: loop exit
PB: predicated region body
PF: predicated region fallthrough
CT: control target
= control target key end

     0   :  { %s1817_s0 = inlined_call_operand.hbm [shape: bf16[2,8,32], index: 0, kind: input, shape index: {}]   ;;  %s1818_s1 = inlined_call_operand.hbm [shape: bf16[32,32], index: 1, kind: input, shape index: {}]   ;;  %s1819_s2 = inlined_call_operand.hbm [shape: bf16[32,32], index: 2, kind: input, shape index: {}]   ;;  %s1820_s3 = inlined_call_operand.hbm [shape: bf16[32,32], index: 3, kind: input, shape index: {}]   ;;  %s1821_s4 = inlined_call_operand.hbm [shape: bf16[32,32], index: 4, kind: input, shape index: {}]   ;;  %s1822_s5 = inlined_call_operand.vmem [shape: f32[1,32], index: 5, kind: input, shape index: {}]   ;;  %s1823_s6 = inlined_call_operand.hbm [shape: f32[2,8,32], index: 6, kind: output, shape index: {0}]   ;;  %s1824_s7 = inlined_call_operand.hbm [shape: f32[2,8,8], index: 7, kind: output, shape index: {1}]  }
   0x1   :  { %1826 = sst [smem:[#allocation23_spill]] %s1818_s1 }
   0x2   :  { %1827 = sst [smem:[#allocation24_spill]] %s1819_s2 }
   0x3   :  { %13 = vsyncpa [#allocation7], 0 }
   0x4   :  { %15 = vsyncpa [#allocation7 + $0x1], 0 }
   0x5   :  { %16 = vsyncpa [#allocation10], 0 }
   0x6   :  { %17 = vsyncpa [#allocation13], 0 }
   0x7   :  { %18 = vsyncpa [#allocation8], 0 }
   0x8   :  { %20 = vsyncpa [#allocation8 + $0x1], 0 }
   0x9   :  { %21 = vsyncpa [#allocation17], 0 }
   0xa   :  { %23 = vsyncpa [#allocation17 + $0x1], 0  ;;  %s1577_s24 = smov 0   ;;  %s1579_s25 = smov 0  }
   0xb   :  { %s1581_s26 = smov 0   ;;  %s1583_s27 = smov 0  }
   0xc   :  { %s1585_s28 = smov 0   ;;  %s1587_s29 = smov 0  }
   0xd LB: > { %s1040_s30 = sadd.s32 4294967295, %s1522_s29   ;;  %p1042_p0 = scmp.ge.s32.totalorder %s1522_s29, 1  ;;  %s1522_s29 = sphi %s1587_s29, %s29_s29   ;;  %s1518_s28 = sphi %s1585_s28, %s1841_s28   ;;  %s1514_s27 = sphi %s1583_s27, %s1840_s27   ;;  %s1510_s26 = sphi %s1581_s26, %s1839_s26   ;;  %s1506_s25 = sphi %s1579_s25, %s1838_s25   ;;  %s1502_s24 = sphi %s1577_s24, %s1837_s24  }
   0xe   : > { %p1611_p1 = scmp.eq.s32.totalorder %s1040_s30, 0  ;;  %p233_p2 = scmp.lt.s32.totalorder %s1522_s29, 3 }
   0xf   : > { %s1829_s1 = sld [smem:[#allocation23_spill]]  ;;  %s1524_s13 = smov [#allocation9]  }
  0x10   : > { %p1619_p3 = pnand %p1042_p0, %p233_p2  ;;  %s246_s14 = sshll.u32 %s1524_s13, 4  ;;  %s247_s14 = int_to_ptr.vmem [resolvable:$true] %s246_s14 }
  0x11   : > { %p1047_p6 = scmp.ge.s32.totalorder %s1522_s29, 2  ;;  %s272_s18 = sshll.u32 %s1820_s3, 4  ;;  %s273_s18 = int_to_ptr.hbm [resolvable:$true] %s272_s18 }
  0x12   : > { %p1138_p4 = pneg %p1619_p3  ;;  %s1525_s19 = smov 64  }
  0x13   : > { %s1526_s20 = smov 4   ;;  %s1527_s21 = smov [#allocation12]  }
  0x14   : > { %p1627_p5 = pnand %p1138_p4, %p1611_p1  ;;  %s274_s22 = sshll.u32 %s1527_s21, 4  ;;  %s275_s22 = int_to_ptr.vmem [resolvable:$true] %s274_s22 }
  0x15   : > { %s244_s11 = sshll.u32 %s1829_s1, 4  ;;  %s1832_s2 = sld [smem:[#allocation24_spill]]  ;;  %s245_s11 = int_to_ptr.hbm [resolvable:$true] %s244_s11 }
  0x16   : > { %1141 = dma.hbm_to_vmem [thread:$0]  (!%p1627_p5), %s245_s11, 256, %s247_s14, [#allocation10], %s1525_s19, %s1525_s19, %s1526_s20  }
  0x17   : > { %1147 = dma.hbm_to_vmem [thread:$0]  (!%p1627_p5), %s273_s18, 256, %s275_s22, [#allocation13], %s1525_s19, %s1525_s19, %s1526_s20  }
  0x18   : > { %s286_s11 = sshll.u32 %s1821_s4, 4  ;;  %s1528_s14 = smov [#allocation11]   ;;  %s287_s11 = int_to_ptr.hbm [resolvable:$true] %s286_s11 }
  0x19   : > { %s260_s17 = sshll.u32 %s1528_s14, 4  ;;  %s1529_s21 = smov [#allocation14]   ;;  %s261_s17 = int_to_ptr.vmem [resolvable:$true] %s260_s17 }
  0x1a   : > { %s288_s23 = sshll.u32 %s1529_s21, 4  ;;  %s41_s18 = sadd.s32 1, %s1518_s28  ;;  %s289_s23 = int_to_ptr.vmem [resolvable:$true] %s288_s23 }
  0x1b   : > { %s258_s10 = sshll.u32 %s1832_s2, 4  ;;  %s1041_s22 = sadd.s32 4294967294, %s1522_s29   ;;  %s259_s10 = int_to_ptr.hbm [resolvable:$true] %s258_s10 }
  0x1c   : > { %1144 = dma.hbm_to_vmem [thread:$0]  (!%p1627_p5), %s259_s10, 256, %s261_s17, [#allocation10], %s1525_s19, %s1525_s19, %s1526_s20  }
  0x1d   : > { %1150 = dma.hbm_to_vmem [thread:$0]  (!%p1627_p5), %s287_s11, 256, %s289_s23, [#allocation13], %s1525_s19, %s1525_s19, %s1526_s20  }
  0x1e   : > { %p43_p7 = scmp.ge.s32.totalorder %s41_s18, 2  ;;  %s48_s9 = sadd.s32 1, %s1510_s26 }
  0x1f   : > { %p55_p8 = scmp.ne.s32.totalorder %s1510_s26, %s1506_s25  ;;  %p56_p9 = scmp.eq.s32.totalorder %s1522_s29, 0 }
  0x20   : > { %s1843_s18 = smov (%p43_p7, %s41_s18), 0  ;;  %p61_p10 = scmp.ne.s32.totalorder %s1506_s25, %s1502_s24 }
  0x21   : > { %s45_s10 = ssub.s32 %s1518_s28, %s1843_s18  ;;  %p192_p11 = scmp.eq.s32.totalorder %s1040_s30, 1 }
  0x22   : > { %p46_p12 = scmp.eq.s32.totalorder %s45_s10, 0  ;;  %p1665_p13 = por %p1611_p1, %p61_p10 }
  0x23   : > { %p1669_p0 = por %p192_p11, %p55_p8  ;;  %p198_p2 = scmp.eq.s32.totalorder %s1041_s22, 1 }
  0x24   : > { %s1674_s20 = scalar_select %p46_p12, %s1510_s26, %s48_s9  }
  0x25   : > { %p57_p4 = por %p56_p9, %p55_p8  ;;  %p1676_p5 = por %p198_p2, %p61_p10 }
  0x26   : > { %s305_s16 = sand.u32 1, %s1510_s26   ;;  %s1049_s30 = sshll.u32 %s1518_s28, 2 }
  0x27   : > { %p1166_p7 = scmp.lt.s32.totalorder %s1522_s29, 2  ;;  %s1048_s11 = sshll.u32 %s305_s16, 2 }
  0x28   : > { %s313_s21 = scalar_lea.hbm %s1817_s0, %s1049_s30  ;;  %s309_s10 = scalar_lea.vmem [#allocation6], %s1048_s11 }
  0x29   : > { %s315_s23 = sshll.u32 %s313_s21, 4  ;;  %s317_s1 = sshll.u32 %s309_s10, 4  ;;  %s316_s23 = int_to_ptr.hbm [resolvable:$true] %s315_s23  ;;  %s318_s1 = int_to_ptr.vmem [resolvable:$true] %s317_s1 }
  0x2a   : > { %p1152_p11 = pnand %p1166_p7, %p57_p4  ;;  %s306_s22 = scalar_lea.sflag [#allocation7], %s305_s16 }
  0x2b   : > { %326 = sbr.rel (%p1619_p3) target bundleno = 993 (0x3e1), region = 44  ;;  %s1689_s9 = sand.u32 (!%p1619_p3), 1, %s1506_s25  }
  0x2c   : > { %1154 = dma.hbm_to_vmem [thread:$0]  (!%p1152_p11), %s316_s23, 64, %s318_s1, %s306_s22  }
  0x2d   : > { %s1051_s2 = sshll.u32 (!%p1619_p3), %s1689_s9, 2  ;;  %s329_s14 = scalar_lea.sflag (!%p1619_p3), [#allocation7], %s1689_s9 }
  0x2e   : > { %s332_s30 = scalar_lea.vmem (!%p1619_p3), [#allocation6], %s1051_s2 }
  0x30   : > { %1481 = dma.done.wait (%p1665_p13), %s329_s14, 64  }
  0x31   : > { %1483 = vsyncadd (%p1665_p13), %s329_s14, 4294967232 }
  0x32   : > { %1485 = dma.done.wait (%p1611_p1), [#allocation10], 512  }
  0x33   : > { %1487 = vsyncadd (%p1611_p1), [#allocation10], 4294966784 }
  0x34   : > { %1489 = dma.done.wait (%p1611_p1), [#allocation13], 512  }
  0x35   : > { %1491 = vsyncadd (%p1611_p1), [#allocation13], 4294966784  ;;  %v1109_v0 = vld [vmem:[#allocation11 + $0x8] sm:$0xff]  ;;  %v1113_v1 = vld [vmem:[#allocation9 + $0x8] sm:$0xff]  ;;  %vm411_vm0 = vcmask 261120   ;;  %vm429_vm1 = vcmask 257024   ;;  %v505_v44 = vlaneseq }
  0x36   : > { %421 = vmatpush.bf16.msra.mxu0 %v1109_v0  ;;  %494 = vmatpush.bf16.msra.mxu2 %v1113_v1  ;;  %v1108_v2 = vld [vmem:[#allocation11] sm:$0xff]  ;;  %v1112_v3 = vld [vmem:[#allocation9] sm:$0xff]  ;;  %v394_v4 = vld [vmem:[%s332_s30] sm:$0xf]  ;;  %vm516_vm2 = vcmask 64512   ;;  %s1530_s1 = smov 112  }
  0x37   : > { %v467_v5 = vld [vmem:[%s332_s30] sm:$0xf]  ;;  %v1111_v6 = vld [vmem:[#allocation12 + $0x8] sm:$0xff]  ;;  %v1110_v9 = vld [vmem:[#allocation12] sm:$0xff]  ;;  %s1531_s2 = smov 120   ;;  %s1532_s8 = smov 104  }
  0x38   : > { %453 = vmatpush.bf16.msra.mxu1 %v1111_v6  ;;  %v506_v47 = vshrl.u32 %v505_v44, 7  ;;  %v510_v48 = vand.u32 127, %v505_v44  ;;  %vm564_vm3 = vcmask 1043456   ;;  %v1533_v53 = vmov -1e+30   ;;  %s1825_s12 = sshll.u32 %s1689_s9, 3 }
  0x39   : > { %vm583_vm9 = vcmask 60416   ;;  %s1753_s15 = scalar_lea.vmem [#allocation16], %s1825_s12  ;;  %s1534_s16 = smov 8   ;;  %vm660_vm10 = vcmask 126016   ;;  %vm735_vm11 = vcmask 191616   ;;  %vm810_vm12 = vcmask 257216  }
  0x3a   : > { %422 = vmatpush.bf16.msra.mxu0 %v1108_v2  ;;  %495 = vmatpush.bf16.msra.mxu2 %v1112_v3  ;;  %vm511_vm4 = vcmp.le.s32.totalorder %v510_v48, %v506_v47  ;;  %s1535_s11 = smov 16   ;;  %s1536_s17 = smov 24  }
  0x3b   : > { %v512_v54 = vsel %vm511_vm4, 0.0, %v1533_v53  ;;  %s1104_s21 = sshll.u32 %s1514_s27, 3  ;;  %s884_s14 = sshll.u32 %s1753_s15, 4  ;;  %s885_s14 = int_to_ptr.vmem [resolvable:$true] %s884_s14 }
  0x3c   : > { %454 = vmatpush.bf16.msra.mxu1 %v1110_v9  ;;  %s882_s22 = scalar_lea.hbm %s1824_s7, %s1104_s21  ;;  %s1420_s27 = scalar_lea.hbm %s1824_s7, 16 }
  0x3d   : > { %1066 = vmatmul.msk.bf16.vlgmr.msra.gmra.mxu0 %vm411_vm0, %v394_v4  ;;  %1084 = vmatmul.msk.bf16.vlgmr.msra.gmra.mxu2 %vm411_vm0, %v467_v5  ;;  %s886_s30 = sshll.u32 %s882_s22, 4  ;;  %s887_s30 = int_to_ptr.hbm [resolvable:$true] %s886_s30 }
  0x3f   : > { %1075 = vmatmul.msk.bf16.vlgmr.msra.gmra.mxu1 %vm411_vm0, %v394_v4 }
  0xba   : > { %v424_v7 = vpop.f32.mrf.mxu0 }
  0xbb   : > { %v428_v8 = vpack.c.bf16 %v424_v7, %v424_v7 }
  0xbc   : > { %v456_v40 = vpop.f32.mrf.mxu1 }
  0xbd   : > { %430 = vst.msk [vmem:[#allocation3] sm:$0xf] %vm429_vm1, %v428_v8  ;;  %v460_v41 = vpack.c.bf16 %v456_v40, %v456_v40 }
  0xbf   : > { %461 = vst.msk [vmem:[#allocation4] sm:$0xf] %vm429_vm1, %v460_v41 }
  0xc0   : > { %v497_v10 = vpop.f32.mrf.mxu2 }
  0xc1   : > { %v501_v11 = vmul.f32 0.17677669, %v497_v10 }
  0xc2   : > { %v426_v12 = vpop.f32.mrf.mxu0 }
  0xc3   : > { %v502_v13 = vpack.c.bf16 %v501_v11, %v501_v11 }
  0xc4   : > { %v514_v14 = vld [vmem:[#allocation3] sm:$0xf]  ;;  %v458_v49 = vpop.f32.mrf.mxu1 }
  0xc5   : > { %v663_v15 = vld [vmem:[#allocation3] sm:$0xf]  ;;  %504 = vst.msk [vmem:[#allocation2] sm:$0xf] %vm429_vm1, %v502_v13  ;;  %v521_v17 = vsel %vm516_vm2, %v514_v14, 0 }
  0xc6   : > { %v588_v16 = vld [vmem:[#allocation3] sm:$0xf]  ;;  %v671_v18 = vunpack.c.l.b16 %v663_v15  ;;  %530 = vmatpush.bf16.xpose.msra.mxu3 %v521_v17  ;;  %v515_v50 = vld [vmem:[#allocation4] sm:$0xf] }
  0xc7   : > { %v596_v19 = vunpack.c.l.b16 %v588_v16  ;;  %v738_v23 = vld [vmem:[#allocation3] sm:$0xf]  ;;  %v566_v51 = vsel %vm564_vm3, %v515_v50, 0  ;;  %v589_v52 = vld [vmem:[#allocation4] sm:$0xf] }
  0xc8   : > { %v672_v20 = vpack.c.b16 %v671_v18, %v671_v18  ;;  %v499_v22 = vpop.f32.mrf.mxu2  ;;  %v746_v24 = vunpack.c.l.b16 %v738_v23  ;;  %575 = vmatpush.bf16.msrb.mxu0 %v566_v51  ;;  %v631_v55 = vunpack.c.l.b16 %v589_v52  ;;  %v739_v62 = vld [vmem:[#allocation4] sm:$0xf] }
  0xc9   : > { %v597_v21 = vpack.c.b16 %v596_v19, %v596_v19  ;;  %v781_v63 = vunpack.c.l.b16 %v739_v62  ;;  %v664_v23 = vld [vmem:[#allocation4] sm:$0xf] }
  0xca   : > { %673 = vrot.lane.b32.xlu1 %v672_v20, %s1530_s1  ;;  %v747_v31 = vpack.c.b16 %v746_v24, %v746_v24  ;;  %v632_v57 = vpack.c.b16 %v631_v55, %v631_v55  ;;  %v706_v24 = vunpack.c.l.b16 %v664_v23 }
  0xcb   : > { %598 = vrot.lane.b32.xlu0 %v597_v21, %s1531_s2  ;;  %v782_v0 = vpack.c.b16 %v781_v63, %v781_v63 }
  0xcc   : > { %v513_v25 = vld [vmem:[#allocation2] sm:$0xf] }
  0xcd   : > { %v662_v26 = vld [vmem:[#allocation2] sm:$0xf]  ;;  %1085 = vmatmul.msk.bf16.vlgmr.msra.gmra.mxu3 %vm516_vm2, %v513_v25  ;;  %v707_v25 = vpack.c.b16 %v706_v24, %v706_v24 }
  0xce   : > { %v587_v27 = vld [vmem:[#allocation2] sm:$0xf]  ;;  %v666_v28 = vunpack.c.l.b16 %v662_v26 }
  0xcf   : > { %v591_v29 = vunpack.c.l.b16 %v587_v27  ;;  %v737_v33 = vld [vmem:[#allocation2] sm:$0xf] }
  0xd0   : > { %v667_v30 = vpack.c.b16 %v666_v28, %v666_v28  ;;  %v741_v34 = vunpack.c.l.b16 %v737_v33 }
  0xd1   : > { %v592_v32 = vpack.c.b16 %v591_v29, %v591_v29 }
  0xd2   : > { %668 = vrot.lane.b32.xlu2 %v667_v30, %s1530_s1  ;;  %748 = vrot.lane.b32.xlu1 %v747_v31, %s1532_s8  ;;  %v742_v35 = vpack.c.b16 %v741_v34, %v741_v34 }
  0xd3   : > { %593 = vrot.lane.b32.xlu0 %v592_v32, %s1531_s2 }
  0xda   : > { %743 = vrot.lane.b32.xlu2 %v742_v35, %s1532_s8 }
  0xe2   : > { %633 = vrot.lane.b32.xlu2 %v632_v57, %s1531_s2  ;;  %s1414_s2 = sshra.s32 %s887_s30, 4  ;;  %s1415_s2 = int_to_ptr.hbm [resolvable:$true] %s1414_s2 }
  0xe3   : > { %p1421_p9 = scmp.lt.s32.totalorder %s1415_s2, %s1824_s7 }
 0x12c   : > { %v669_v42 = vpop.permute.xlu2 %668 }
 0x134   : > { %v744_v60 = vpop.permute.xlu2 %743 }
 0x13c   : > { %v674_v36 = vpop.permute.xlu1 %673  ;;  %v634_v11 = vpop.permute.xlu2 %633 }
 0x13d   : > { %v599_v37 = vpop.permute.xlu0 %598  ;;  %v679_v39 = vsel %vm516_vm2, %v674_v36, 0  ;;  %v639_v13 = vsel %vm564_vm3, %v634_v11, 0 }
 0x13e   : > { %v604_v38 = vsel %vm516_vm2, %v599_v37, 0  ;;  %688 = vmatpush.bf16.xpose.msrb.mxu3 %v679_v39  ;;  %648 = vmatpush.bf16.msrb.mxu2 %v639_v13 }
 0x13f   : > { %613 = vmatpush.bf16.xpose.msrb.mxu1 %v604_v38 }
 0x144   : > { %v749_v43 = vpop.permute.xlu1 %748 }
 0x145   : > { %v754_v45 = vsel %vm516_vm2, %v749_v43, 0  ;;  %v594_v46 = vpop.permute.xlu0 %593  ;;  %1089 = vmatmul.msk.bf16.vlgmr.msrb.gmra.mxu3 %vm516_vm2, %v669_v42 }
 0x146   : > { %1087 = vmatmul.msk.bf16.vlgmr.msrb.gmra.mxu1 %vm516_vm2, %v594_v46 }
 0x147   : > { %763 = vmatpush.bf16.xpose.msra.mxu1 %v754_v45 }
 0x150   : > { %v532_v56 = vpop.f32.mrf.mxu3 }
 0x151   : > { %v533_v58 = vadd.f32 %v532_v56, %v512_v54 }
 0x153   : > { %v536_v59 = vsel %vm516_vm2, %v533_v58, -inf }
 0x154   : > { %537 = vmax.xlane.f32.xlu1 %v536_v59 }
 0x156   : > { %1091 = vmatmul.msk.bf16.vlgmr.msra.gmra.mxu1 %vm516_vm2, %v744_v60 }
 0x158   : > { %v534_v61 = vpop.f32.mrf.mxu3 }
 0x16d   : > { %783 = vrot.lane.b32.xlu1 %v782_v0, %s1532_s8  ;;  %s1416_s8 = scalar_lea.hbm %s1415_s2, 8 }
 0x16e   : > { %p1417_p1 = scmp.ne.s32.totalorder %s1415_s2, %s1416_s8  ;;  %p1422_p10 = scmp.lt.s32.totalorder %s1420_s27, %s1416_s8 }
 0x170   : > { %p1418_p3 = pnand %p1417_p1, %p1669_p0  ;;  %p1423_p12 = por %p1422_p10, %p1421_p9 }
 0x172   : > { %p1419_p8 = pneg %p1418_p3 }
 0x174   : > { %p1424_p13 = pnand %p1423_p12, %p1419_p8 }
 0x1c3   : > { %v615_v1 = vpop.f32.mrf.mxu1 }
 0x1c4   : > { %v616_v2 = vadd.f32 %v615_v1, %v512_v54 }
 0x1c6   : > { %v619_v3 = vsel %vm516_vm2, %v616_v2, -inf }
 0x1c7   : > { %620 = vmax.xlane.f32.xlu0 %v619_v3  ;;  %v538_v5 = vpop.xlane.xlu1 %537 }
 0x1c8   : > { %v690_v4 = vpop.f32.mrf.mxu3  ;;  %v539_v6 = vsub.f32 %v533_v58, %v538_v5 }
 0x1c9   : > { %v691_v7 = vadd.f32 %v690_v4, %v512_v54 }
 0x1ca   : > { %v540_v8 = vmul.f32 1.442695, %v539_v6 }
 0x1cb   : > { %v617_v9 = vpop.f32.mrf.mxu1  ;;  %v694_v10 = vsel %vm516_vm2, %v691_v7, -inf }
 0x1cc   : > { %1234 = vpow2.f32 %v540_v8 }
 0x1cf   : > { %695 = vmax.xlane.f32.xlu0 %v694_v10 }
 0x1d0   : > { %v692_v12 = vpop.f32.mrf.mxu3 }
 0x1d2   : > { %v1732_v14 = vpop.eup %1234 }
 0x1d3   : > { %v765_v15 = vpop.f32.mrf.mxu1  ;;  %v542_v17 = vsel %vm516_vm2, %v1732_v14, 0.0  ;;  %v560_v18 = vpack.c.bf16 %v1732_v14, %v1732_v14 }
 0x1d4   : > { %v766_v16 = vadd.f32 %v765_v15, %v512_v54  ;;  %543 = vadd.xlane.f32.xlu1 %v542_v17  ;;  %v1115_v17 = vld [vmem:[#allocation14 + $0x8] sm:$0xff] }
 0x1d5   : > { %1086 = vmatmul.msk.bf16.vlgmr.msrb.gmra.mxu0 %vm516_vm2, %v560_v18  ;;  %842 = vmatpush.bf16.msra.mxu3 %v1115_v17  ;;  %v1114_v18 = vld [vmem:[#allocation14] sm:$0xff] }
 0x1d6   : > { %v769_v19 = vsel %vm516_vm2, %v766_v16, -inf }
 0x1d7   : > { %770 = vmax.xlane.f32.xlu2 %v769_v19 }
 0x1d9   : > { %843 = vmatpush.bf16.msra.mxu3 %v1114_v18 }
 0x1db   : > { %v767_v20 = vpop.f32.mrf.mxu1 }
 0x1df   : > { %v784_v21 = vpop.permute.xlu1 %783 }
 0x1e0   : > { %v789_v22 = vsel %vm564_vm3, %v784_v21, 0 }
 0x1e1   : > { %798 = vmatpush.bf16.msra.mxu2 %v789_v22 }
 0x1ef   : > { %708 = vrot.lane.b32.xlu2 %v707_v25, %s1530_s1  ;;  %s856_s1 = scalar_lea.sflag [#allocation17], %s1689_s9 }
 0x23a   : > { %v621_v26 = vpop.xlane.xlu0 %620 }
 0x23b   : > { %v622_v27 = vsub.f32 %v616_v2, %v621_v26 }
 0x23d   : > { %v623_v28 = vmul.f32 1.442695, %v622_v27 }
 0x23f   : > { %1236 = vpow2.f32 %v623_v28 }
 0x242   : > { %v696_v29 = vpop.xlane.xlu0 %695 }
 0x243   : > { %v697_v30 = vsub.f32 %v691_v7, %v696_v29 }
 0x245   : > { %v1237_v31 = vpop.eup %1236  ;;  %v698_v32 = vmul.f32 1.442695, %v697_v30 }
 0x246   : > { %v625_v33 = vsel %vm516_vm2, %v1237_v31, 0.0  ;;  %v629_v34 = vpack.c.bf16 %v1237_v31, %v1237_v31 }
 0x247   : > { %1238 = vpow2.f32 %v698_v32  ;;  %626 = vadd.xlane.f32.xlu0 %v625_v33  ;;  %v544_v35 = vpop.xlane.xlu1 %543 }
 0x248   : > { %1088 = vmatmul.msk.bf16.vlgmr.msrb.gmra.mxu2 %vm516_vm2, %v629_v34  ;;  %1240 = vrcp.f32 %v544_v35  ;;  %v556_v45 = vand.u32 2147483648, %v544_v35  ;;  %v554_v49 = vand.u32 2147483647, %v544_v35  ;;  %vm550_vm6 = vweird.f32 %v544_v35 }
 0x24a   : > { %v771_v36 = vpop.xlane.xlu2 %770  ;;  %v557_v55 = vor.u32 1.1754944e-38, %v556_v45  ;;  %vm555_vm8 = vcmp.eq.f32.partialorder %v554_v49, 8.507059e+37 }
 0x24b   : > { %v772_v37 = vsub.f32 %v766_v16, %v771_v36 }
 0x24d   : > { %v1239_v38 = vpop.eup %1238  ;;  %v773_v39 = vmul.f32 1.442695, %v772_v37 }
 0x24e   : > { %v700_v40 = vsel %vm516_vm2, %v1239_v38, 0.0  ;;  %v1241_v41 = vpop.eup %1240  ;;  %v704_v51 = vpack.c.bf16 %v1239_v38, %v1239_v38 }
 0x24f   : > { %1242 = vpow2.f32 %v773_v39  ;;  %701 = vadd.xlane.f32.xlu0 %v700_v40  ;;  %v546_v42 = vmul.f32 %v1241_v41, %v544_v35  ;;  %vm551_vm5 = vweird.f32 %v1241_v41 }
 0x250   : > { %vm552_vm7 = vmor %vm550_vm6, %vm551_vm5 }
 0x251   : > { %v547_v43 = vsub.f32 1.0, %v546_v42 }
 0x252   : > { %v709_v44 = vpop.permute.xlu2 %708  ;;  %v577_v47 = vpop.f32.mrf.mxu0 }
 0x253   : > { %v714_v46 = vsel %vm564_vm3, %v709_v44, 0  ;;  %v548_v48 = vmul.f32 %v1241_v41, %v547_v43 }
 0x254   : > { %723 = vmatpush.bf16.msra.mxu0 %v714_v46 }
 0x255   : > { %v1243_v50 = vpop.eup %1242  ;;  %v549_v53 = vadd.f32 %v1241_v41, %v548_v48 }
 0x256   : > { %v779_v52 = vpack.c.bf16 %v1243_v50, %v1243_v50  ;;  %v775_v54 = vsel %vm516_vm2, %v1243_v50, 0.0 }
 0x257   : > { %776 = vadd.xlane.f32.xlu0 %v775_v54  ;;  %1090 = vmatmul.msk.bf16.vlgmr.msra.gmra.mxu0 %vm516_vm2, %v704_v51  ;;  %v553_v56 = vsel %vm552_vm7, %v1241_v41, %v549_v53 }
 0x258   : > { %1092 = vmatmul.msk.bf16.vlgmr.msra.gmra.mxu2 %vm516_vm2, %v779_v52  ;;  %v558_v57 = vsel %vm555_vm8, %v557_v55, %v553_v56 }
 0x259   : > { %v581_v58 = vmul.f32 %v577_v47, %v558_v57  ;;  %v585_v59 = vmul.f32 %v1732_v14, %v558_v57 }
 0x25a   : > { %v579_v60 = vpop.f32.mrf.mxu0 }
 0x25b   : > { %v582_v61 = vpack.c.bf16 %v581_v58, %v581_v58  ;;  %586 = vst.msk [vmem:[%s1753_s15] sm:$0xff] %vm516_vm2, %v585_v59 }
 0x25d   : > { %584 = vst.msk [vmem:[#allocation5] sm:$0xf] %vm583_vm9, %v582_v61 }
 0x2ba   : > { %v627_v62 = vpop.xlane.xlu0 %626 }
 0x2bb   : > { %1244 = vrcp.f32 %v627_v62 }
 0x2c1   : > { %v1245_v0 = vpop.eup %1244 }
 0x2c2   : > { %v702_v63 = vpop.xlane.xlu0 %701 }
 0x2c3   : > { %1246 = vrcp.f32 %v702_v63 }
 0x2c9   : > { %v1247_v6 = vpop.eup %1246 }
 0x2ca   : > { %v777_v4 = vpop.xlane.xlu0 %776 }
 0x2cb   : > { %v650_v1 = vpop.f32.mrf.mxu2  ;;  %1248 = vrcp.f32 %v777_v4 }
 0x2cc   : > { %v654_v2 = vmul.f32 %v1245_v0, %v650_v1 }
 0x2ce   : > { %v655_v3 = vpack.c.bf16 %v654_v2, %v654_v2 }
 0x2d0   : > { %657 = vrot.lane.b32.xlu2 %v655_v3, %s1534_s16 }
 0x2d1   : > { %v1249_v10 = vpop.eup %1248 }
 0x2d3   : > { %v652_v5 = vpop.f32.mrf.mxu2 }
 0x2d4   : > { %v725_v7 = vpop.f32.mrf.mxu0 }
 0x2d5   : > { %v729_v8 = vmul.f32 %v1247_v6, %v725_v7 }
 0x2d7   : > { %v730_v9 = vpack.c.bf16 %v729_v8, %v729_v8 }
 0x2d9   : > { %732 = vrot.lane.b32.xlu0 %v730_v9, %s1535_s11 }
 0x2db   : > { %v800_v11 = vpop.f32.mrf.mxu2 }
 0x2dc   : > { %v804_v12 = vmul.f32 %v1249_v10, %v800_v11  ;;  %v727_v13 = vpop.f32.mrf.mxu0 }
 0x2de   : > { %v805_v14 = vpack.c.bf16 %v804_v12, %v804_v12 }
 0x2e0   : > { %807 = vrot.lane.b32.xlu2 %v805_v14, %s1536_s17 }
 0x2e3   : > { %v802_v15 = vpop.f32.mrf.mxu2 }
 0x32a   : > { %v658_v16 = vpop.permute.xlu2 %657 }
 0x32b   : > { %661 = vst.msk [vmem:[#allocation5] sm:$0xf] %vm660_vm10, %v658_v16 }
 0x33a   : > { %v808_v20 = vpop.permute.xlu2 %807 }
 0x34b   : > { %v733_v19 = vpop.permute.xlu0 %732 }
 0x34c   : > { %736 = vst.msk [vmem:[#allocation5] sm:$0xf] %vm735_vm11, %v733_v19 }
 0x34d   : > { %811 = vst.msk [vmem:[#allocation5] sm:$0xf] %vm810_vm12, %v808_v20 }
 0x354   : > { %v812_v21 = vld [vmem:[#allocation5] sm:$0xf] }
 0x355   : > { %1101 = vmatmul.msk.bf16.vlgmr.msra.gmra.mxu3 %vm411_vm0, %v812_v21 }
 0x356   : > { %1427 = shalt.err (!%p1424_p13)
}
 0x357   : > { %1135 = dma.vmem_to_hbm [thread:$0]  (%p1669_p0), %s885_s14, 128, %s887_s30, %s856_s1   ;;  %v1233_v22 = vld [vmem:[%s1822_s5] ss:$0 sm:$0xff] }
 0x358   : > { %s867_s10 = scalar_lea.hbm %s1823_s6, %s1104_s21  ;;  %s1836_s12 = sshll.u32 %s1689_s9, 3 }
 0x359   : > { %s381_s2 = scalar_lea.vmem [#allocation15], %s1836_s12  ;;  %s871_s11 = sshll.u32 %s867_s10, 4  ;;  %s872_s11 = int_to_ptr.hbm [resolvable:$true] %s871_s11 }
 0x35a   : > { %s869_s8 = sshll.u32 %s381_s2, 4  ;;  %s851_s14 = scalar_lea.sflag [#allocation8], %s1689_s9  ;;  %s870_s8 = int_to_ptr.vmem [resolvable:$true] %s869_s8 }
 0x35b   : > { %s1442_s30 = sshra.s32 %s872_s11, 4  ;;  %s1448_s17 = scalar_lea.hbm %s1823_s6, 16  ;;  %s1443_s30 = int_to_ptr.hbm [resolvable:$true] %s1442_s30 }
 0x35c   : > { %s1444_s1 = scalar_lea.hbm %s1443_s30, 8  ;;  %p1449_p11 = scmp.lt.s32.totalorder %s1443_s30, %s1823_s6 }
 0x35d   : > { %p1445_p2 = scmp.ne.s32.totalorder %s1443_s30, %s1444_s1  ;;  %p1450_p1 = scmp.lt.s32.totalorder %s1448_s17, %s1444_s1 }
 0x35f   : > { %p1446_p4 = pnand %p1445_p2, %p1669_p0  ;;  %p1451_p3 = por %p1450_p1, %p1449_p11 }
 0x361   : > { %p1447_p7 = pneg %p1446_p4 }
 0x363   : > { %p1452_p8 = pnand %p1451_p3, %p1447_p7 }
 0x3d8   : > { %v845_v23 = vpop.f32.mrf.mxu3 }
 0x3d9   : > { %v846_v24 = vadd.f32 %v1233_v22, %v845_v23 }
 0x3db   : > { %849 = vst.msk [vmem:[%s381_s2] sm:$0xff] %vm411_vm0, %v846_v24 }
 0x3dc   : > { %1455 = shalt.err (!%p1452_p8)
}
 0x3dd   : > { %1134 = dma.vmem_to_hbm [thread:$0]  (%p1669_p0), %s870_s8, 128, %s872_s11, %s851_s14  }
 0x3e0   : > { %v847_v25 = vpop.f32.mrf.mxu3 }
 0x3e1 PF: > { %s898_s9 = sand.u32 1, %s1502_s24   ;;  %p1156_p9 = pnand %p1047_p6, %p1676_p5 }
 0x3e2   : > { %s899_s10 = scalar_lea.sflag [#allocation8], %s898_s9 }
 0x3e3   : > { %p1157_p10 = pneg %p1156_p9 }
 0x3e5   : > { %1493 = dma.done.wait (%p1157_p10), %s899_s10, 128  }
 0x3e6   : > { %1495 = vsyncadd (%p1157_p10), %s899_s10, 4294967168  ;;  %s909_s22 = scalar_lea.sflag [#allocation17], %s898_s9 }
 0x3e7   : > { %1497 = dma.done.wait (%p1157_p10), %s909_s22, 128  }
 0x3e8   : > { %1499 = vsyncadd (%p1157_p10), %s909_s22, 4294967168  ;;  %s29_s29 = sadd.s32 1, %s1522_s29   ;;  %s1837_s24 = smov %s1506_s25 }
 0x3e9   : > { %p26_p12 = scmp.ge.s32.totalorder %s29_s29, 4   ;;  %s1838_s25 = smov %s1510_s26 }
 0x3ea   : > { %s1839_s26 = smov %s1674_s20  ;;  %s1840_s27 = smov %s1518_s28 }
 0x3eb   : > { %s1841_s28 = smov %s1843_s18  ;;  %28 = sbr.rel (!%p26_p12) target bundleno = 13 (0xd), region = 127 }
 0x3f0   :  { %915 = vsyncpa [#allocation7], 1 }
 0x3f1   :  { %917 = vsyncpa [#allocation7 + $0x1], 1 }
 0x3f2   :  { %918 = vsyncpa [#allocation10], 1 }
 0x3f3   :  { %919 = vsyncpa [#allocation13], 1 }
 0x3f4   :  { %920 = vsyncpa [#allocation8], 1 }
 0x3f5   :  { %922 = vsyncpa [#allocation8 + $0x1], 1 }
 0x3f6   :  { %923 = vsyncpa [#allocation17], 1 }
 0x3f7   :  { %925 = vsyncpa [#allocation17 + $0x1], 1 }

</bundles_post_ra>
